<compile_context>
chip_gen: v7x
topology: tpu7x:2x2x1
jax: 0.10.0
libtpu: 0.0.40
codegen_flags: <defaults>
</compile_context>

<pallas_src>
import functools

import jax
import jax.numpy as jnp
import numpy as np
from jax.experimental import pallas as pl
from jax.experimental.pallas import tpu as pltpu

LEAKY_SLOPE = 0.2
OUT_PAD = 8            # final 3-channel convs padded to 8 lanes (was 128)


def _leaky_f32(v):
    return jnp.where(v >= 0, v, LEAKY_SLOPE * v)


# ----------------------------------------------------------------------------
# Fused block kernel.
#   conv0   : "valid" KxK stride-1 conv on kx-tap-folded input(s) built in the
#             wrapper -> K dots of depth kx*Cin (padded to a 128 multiple).
#             Multiple inputs (fuse blocks) accumulate into the same acc.
#   conv1..n: 3x3 convs; the intermediate is written kx-folded into a shared,
#             halo-zeroed VMEM scratch -> 3 dots of depth 3*Cin each.
#   epilogue: optional residual add, store as (BB, Ho, Wo, out_c).
# Batch (BB images per grid step) is folded into the matmul M dimension.
# ----------------------------------------------------------------------------
def _fused_block_kernel(*refs, K0, Ho, Wo, BB, n_x, rest, leakys, has_res,
                        out_c):
    idx = 0
    xf_refs = refs[idx:idx + n_x]; idx += n_x
    w0_refs = refs[idx:idx + n_x]; idx += n_x
    b0_ref = refs[idx]; idx += 1
    rest_refs = []
    for _ in rest:
        rest_refs.append((refs[idx], refs[idx + 1])); idx += 2
    res_ref = None
    if has_res:
        res_ref = refs[idx]; idx += 1
    o_ref = refs[idx]; idx += 1
    scr = refs[idx] if len(refs) > idx else None

    M = BB * Ho * Wo
    c0 = w0_refs[0].shape[-1]

    # ---- conv 0 (tap-folded, lane-padded input(s)) ----
    acc = jnp.zeros((M, c0), jnp.float32)
    for xi in range(n_x):
        xf, w0 = xf_refs[xi], w0_refs[xi]
        kc = xf.shape[-1]
        for ky in range(K0):
            lhs = xf[:, ky:ky + Ho, :, :].reshape(M, kc)
            acc = acc + jnp.dot(lhs, w0[ky],
                                preferred_element_type=jnp.float32)
    acc = acc + b0_ref[...]
    if leakys[0]:
        acc = _leaky_f32(acc)

    # ---- remaining 3x3 convs: kx-folded shared VMEM scratch ----
    if rest:
        cs = scr.shape[-1]
        # zero only the 1-pixel top/bottom halo rows (cheap, megacore-safe)
        scr[:, 0:1, :, :] = jnp.zeros((BB, 1, Wo, cs), scr.dtype)
        scr[:, Ho + 1:Ho + 2, :, :] = jnp.zeros((BB, 1, Wo, cs), scr.dtype)

    for i, (cin, cout) in enumerate(rest):
        w_ref, b_ref = rest_refs[i]
        act = acc.reshape(BB, Ho, Wo, cin).astype(scr.dtype)
        # boundary columns of the kx=0 / kx=2 channel blocks must be zero
        zc = jnp.zeros((BB, Ho, 1, cin), scr.dtype)
        scr[:, 1:Ho + 1, 0:1, 0:cin] = zc
        scr[:, 1:Ho + 1, Wo - 1:Wo, 2 * cin:3 * cin] = zc
        # kx-folded interior writes: scr[., r, x, kx*cin+c] = xpad[., r, x+kx, c]
        scr[:, 1:Ho + 1, 1:Wo, 0:cin] = act[:, :, 0:Wo - 1, :]
        scr[:, 1:Ho + 1, :, cin:2 * cin] = act
        scr[:, 1:Ho + 1, 0:Wo - 1, 2 * cin:3 * cin] = act[:, :, 1:Wo, :]
        # 3 dots of depth 3*cin (instead of 9 shallow dots)
        acc = jnp.zeros((M, cout), jnp.float32)
        for ky in range(3):
            lhs = scr[:, ky:ky + Ho, :, 0:3 * cin].reshape(M, 3 * cin)
            acc = acc + jnp.dot(lhs, w_ref[ky],
                                preferred_element_type=jnp.float32)
        acc = acc + b_ref[...]
        if leakys[1 + i]:
            acc = _leaky_f32(acc)

    if has_res:
        acc = acc + res_ref[...].reshape(M, out_c).astype(jnp.float32)

    o_ref[...] = acc.reshape(BB, Ho, Wo, out_c).astype(o_ref.dtype)


# ----------------------------------------------------------------------------
# Wrapper-side (cheap XLA) data rearrangements.
# ----------------------------------------------------------------------------
def _fold_kx(x, k):
    """(B, H, W, C) -> (B, H, W-k+1, k*C): fold k horizontal taps into channels."""
    w = x.shape[2]
    return jnp.concatenate([x[:, :, i:w - k + 1 + i, :] for i in range(k)],
                           axis=-1)


def _space_to_depth2(x):
    b, h, w, c = x.shape
    x = x.reshape(b, h // 2, 2, w // 2, 2, c)
    x = jnp.transpose(x, (0, 1, 3, 2, 4, 5))
    return x.reshape(b, h // 2, w // 2, 4 * c)


def _depth_to_space2(x, cout):
    b, h, w, _ = x.shape
    x = x.reshape(b, h, w, 2, 2, cout)
    x = jnp.transpose(x, (0, 1, 3, 2, 4, 5))
    return x.reshape(b, 2 * h, 2 * w, cout)


def run_block(prep, xs, residual=None):
    """Run one fused conv block (one pallas_call).

    xs: one NHWC activation, or a list of them (fuse blocks: weight is split
    along Cin and the per-input dots are summed in-kernel).
    residual: optional NHWC tensor added after the block (fused epilogue).
    """
    if not isinstance(xs, (list, tuple)):
        xs = [xs]
    bsz, h, w, _ = xs[0].shape
    kind = prep["kind"]

    xfs = []
    for x, w0 in zip(xs, prep["w0s"]):
        xp = jnp.pad(x, ((0, 0), (1, 1), (1, 1), (0, 0)))
        if kind == "conv3":            # 3x3 stride-1 first conv (also deconv form)
            xf = _fold_kx(xp, 3)
            k0, ho, wo = 3, h, w
        elif kind == "conv_s2":        # 3x3 stride-2 first conv via space-to-depth
            xf = _fold_kx(_space_to_depth2(xp), 2)
            k0, ho, wo = 2, h // 2, w // 2
        else:
            raise ValueError(kind)
        kc = w0.shape[1]               # folded K padded to a multiple of 128
        if xf.shape[-1] < kc:
            xf = jnp.pad(xf, ((0, 0), (0, 0), (0, 0), (0, kc - xf.shape[-1])))
        xfs.append(xf.astype(jnp.bfloat16))

    rest = prep["rest"]
    out_c = prep["out_c"]
    # keep >=2 grid steps when possible so v7x megacore has work per core;
    # the per-step batch is folded into the matmul M dimension.
    n_grid = 2 if (bsz % 2 == 0 and bsz >= 2) else 1
    bb = bsz // n_grid

    kernel = functools.partial(
        _fused_block_kernel, K0=k0, Ho=ho, Wo=wo, BB=bb, n_x=len(xfs),
        rest=tuple((cin, cout) for (_, _, cin, cout) in rest),
        leakys=prep["leakys"], has_res=residual is not None, out_c=out_c)

    in_arrays = list(xfs) + list(prep["w0s"]) + [prep["b0"]]
    in_specs = ([pl.BlockSpec((bb,) + x.shape[1:], lambda i: (i, 0, 0, 0))
                 for x in xfs]
                + [pl.BlockSpec(w0.shape, lambda i: (0, 0, 0))
                   for w0 in prep["w0s"]]
                + [pl.BlockSpec(prep["b0"].shape, lambda i: (0, 0))])
    for (wr, br, _, _) in rest:
        in_arrays += [wr, br]
        in_specs += [pl.BlockSpec(wr.shape, lambda i: (0, 0, 0)),
                     pl.BlockSpec(br.shape, lambda i: (0, 0))]
    if residual is not None:
        in_arrays.append(residual.astype(jnp.bfloat16))
        in_specs.append(pl.BlockSpec((bb, ho, wo, residual.shape[-1]),
                                     lambda i: (i, 0, 0, 0)))

    scratch_shapes = []
    if rest:
        max_cin = max(cin for (_, _, cin, _) in rest)
        scratch_shapes.append(
            pltpu.VMEM((bb, ho + 2, wo, 3 * max_cin), jnp.bfloat16))

    return pl.pallas_call(
        kernel,
        out_shape=jax.ShapeDtypeStruct((bsz, ho, wo, out_c), prep["out_dtype"]),
        grid=(n_grid,),
        in_specs=in_specs,
        out_specs=pl.BlockSpec((bb, ho, wo, out_c), lambda i: (i, 0, 0, 0)),
        scratch_shapes=scratch_shapes,
        compiler_params=pltpu.CompilerParams(
            dimension_semantics=("parallel",)),
    )(*in_arrays)


# ----------------------------------------------------------------------------
# Parameter construction (shapes from the module's __init__) and preparation
# into kernel-ready (folded / split / phase-decomposed, bf16) form.
# ----------------------------------------------------------------------------
_SPECS = {
    "input_layer":         [("c", 23, 32, 1, True), ("c", 32, 32, 1, True)],
    "encoder_layer_1":     [("c", 32, 32, 1, True), ("c", 32, 32, 1, True)],
    "encoder_layer_2":     [("c", 32, 64, 2, True), ("c", 64, 64, 1, True), ("c", 64, 64, 1, True)],
    "encoder_layer_3":     [("c", 64, 128, 2, True), ("c", 128, 128, 1, True), ("c", 128, 128, 1, True)],
    "layer_1_neighbor_tf": [("c", 32, 32, 1, True), ("c", 32, 32, 1, True)],
    "layer_2_neighbor_tf": [("c", 64, 64, 1, True), ("c", 64, 64, 1, True)],
    "layer_1_fuse":        [("c", 64, 64, 1, True), ("c", 64, 32, 1, True)],
    "layer_2_fuse":        [("c", 128, 128, 1, True), ("c", 128, 64, 1, True)],
    "layer_3_fuse":        [("c", 256, 256, 1, True), ("c", 256, 128, 1, True)],
    "decoder_layer_3":     [("d", 128, 64, 2, True), ("c", 64, 64, 1, True), ("c", 64, 64, 1, True)],
    "decoder_layer_2":     [("d", 64, 32, 2, True), ("c", 32, 32, 1, True), ("c", 32, 32, 1, True)],
    "out_layer_3":         [("c", 128, 128, 1, True), ("c", 128, 64, 1, True), ("c", 64, 3, 1, False)],
    "out_layer_2":         [("c", 64, 64, 1, True), ("c", 64, 32, 1, True), ("c", 32, 3, 1, False)],
    "out_layer_1":         [("c", 32, 32, 1, True), ("c", 32, 32, 1, True), ("c", 32, 3, 1, False)],
}


def make_params(key):
    params = {}
    for name, lspecs in _SPECS.items():
        plist = []
        for kind, cin, cout, stride, leaky in lspecs:
            key, kw, kb = jax.random.split(key, 3)
            if kind == "c":
                scale = 1.0 / np.sqrt(cin * 9)
                w = jax.random.normal(kw, (3, 3, cin, cout), jnp.float32) * scale
            else:   # ConvTranspose2d weight in PyTorch layout (Cin, Cout, 4, 4)
                scale = 1.0 / np.sqrt(cin * 16)
                w = jax.random.normal(kw, (cin, cout, 4, 4), jnp.float32) * scale
            b = jax.random.normal(kb, (cout,), jnp.float32) * 0.01
            plist.append(dict(kind=kind, w=w, b=b, stride=stride, leaky=leaky))
        params[name] = plist
    return params


def _prep_bias(b):
    return jnp.asarray(b, jnp.float32).reshape(1, -1)


def _fold_w3(w):
    """(3,3,Cin,Cout) -> (3, 3*Cin, Cout), matching the kx-folded input layout."""
    w = jnp.asarray(w, jnp.float32)
    return w.reshape(3, 3 * w.shape[2], w.shape[3])


def _finish_w0(wf):
    """Zero-pad folded contraction depth to a multiple of 128, cast to bf16."""
    kc = wf.shape[1]
    kc_pad = ((kc + 127) // 128) * 128
    if kc_pad > kc:
        wf = jnp.pad(wf, ((0, 0), (0, kc_pad - kc), (0, 0)))
    return wf.astype(jnp.bfloat16)


def _prep_s2_w(w):
    # 3x3 / stride-2 / pad-1 conv  ==  2x2 valid conv on the space-to-depth input.
    cin, cout = w.shape[2], w.shape[3]
    w4 = jnp.pad(jnp.asarray(w, jnp.float32), ((0, 1), (0, 1), (0, 0), (0, 0)))
    w6 = w4.reshape(2, 2, 2, 2, cin, cout)            # (a, py, b, px, ci, co)
    w6 = jnp.transpose(w6, (0, 2, 1, 3, 4, 5))        # (a, b, py, px, ci, co)
    return w6.reshape(2, 2 * 4 * cin, cout)


def _prep_deconv_w(w_t):
    # ConvTranspose2d(4,2,1): exact 4-phase decomposition; the 4 output phases
    # become 4*Cout channels of a 3x3 conv at the input resolution.
    w_np = np.asarray(w_t, np.float32)                # (Cin, Cout, 4, 4)
    cin, cout = w_np.shape[0], w_np.shape[1]
    tap = {(0, 0): 3, (0, 1): 1, (1, 1): 2, (1, 2): 0}   # (phase, window pos) -> tap
    w3 = np.zeros((3, 3, cin, 4 * cout), np.float32)
    for py in range(2):
        for px in range(2):
            for r in range(3):
                ky = tap.get((py, r))
                if ky is None:
                    continue
                for s in range(3):
                    kx = tap.get((px, s))
                    if kx is None:
                        continue
                    w3[r, s, :, (2 * py + px) * cout:(2 * py + px + 1) * cout] = \
                        w_np[:, :, ky, kx]
    return jnp.asarray(w3).reshape(3, 3 * cin, 4 * cout)


def _rest_conv(layer, cout_pad=None):
    w = jnp.asarray(layer["w"], jnp.float32)
    b = jnp.asarray(layer["b"], jnp.float32)
    cin, cout = w.shape[2], w.shape[3]
    if cout_pad is not None and cout_pad > cout:
        w = jnp.pad(w, ((0, 0), (0, 0), (0, 0), (0, cout_pad - cout)))
        b = jnp.pad(b, (0, cout_pad - cout))
        cout = cout_pad
    return (w.reshape(3, 3 * cin, cout).astype(jnp.bfloat16),
            b.reshape(1, -1), cin, cout)


def prepare_params(params):
    prep = {}
    for name, layers in params.items():
        if name.startswith("decoder_layer"):
            d = layers[0]
            cd = d["w"].shape[1]
            prep[name + ".deconv"] = dict(
                kind="conv3",
                w0s=[_finish_w0(_prep_deconv_w(d["w"]))],
                b0=_prep_bias(jnp.tile(jnp.asarray(d["b"], jnp.float32), 4)),
                rest=[], leakys=(True,), out_c=4 * cd,
                out_dtype=jnp.bfloat16, deconv_cout=cd)
            prep[name + ".tail"] = dict(
                kind="conv3",
                w0s=[_finish_w0(_fold_w3(layers[1]["w"]))],
                b0=_prep_bias(layers[1]["b"]),
                rest=[_rest_conv(layers[2])],
                leakys=(True, True), out_c=layers[2]["w"].shape[-1],
                out_dtype=jnp.bfloat16)
        elif name.startswith("out_layer"):
            rest = [_rest_conv(layers[1]), _rest_conv(layers[2], OUT_PAD)]
            prep[name] = dict(
                kind="conv3",
                w0s=[_finish_w0(_fold_w3(layers[0]["w"]))],
                b0=_prep_bias(layers[0]["b"]),
                rest=rest, leakys=(True, True, False),
                out_c=OUT_PAD, out_dtype=jnp.float32, slice_c=3)
        elif name in ("encoder_layer_2", "encoder_layer_3"):
            rest = [_rest_conv(l) for l in layers[1:]]
            prep[name] = dict(
                kind="conv_s2",
                w0s=[_finish_w0(_prep_s2_w(layers[0]["w"]))],
                b0=_prep_bias(layers[0]["b"]),
                rest=rest, leakys=(True,) * len(layers),
                out_c=layers[-1]["w"].shape[-1], out_dtype=jnp.bfloat16)
        elif name.endswith("_fuse"):
            # first conv weight split along Cin: x-features / neighbor-features
            w0 = jnp.asarray(layers[0]["w"], jnp.float32)
            cx = w0.shape[2] // 2
            rest = [_rest_conv(l) for l in layers[1:]]
            prep[name] = dict(
                kind="conv3",
                w0s=[_finish_w0(_fold_w3(w0[:, :, :cx, :])),
                     _finish_w0(_fold_w3(w0[:, :, cx:, :]))],
                b0=_prep_bias(layers[0]["b"]),
                rest=rest, leakys=(True,) * len(layers),
                out_c=layers[-1]["w"].shape[-1], out_dtype=jnp.bfloat16)
        else:   # input_layer, encoder_layer_1, layer_*_neighbor_tf
            rest = [_rest_conv(l) for l in layers[1:]]
            prep[name] = dict(
                kind="conv3",
                w0s=[_finish_w0(_fold_w3(layers[0]["w"]))],
                b0=_prep_bias(layers[0]["b"]),
                rest=rest, leakys=(True,) * len(layers),
                out_c=layers[-1]["w"].shape[-1], out_dtype=jnp.bfloat16)
    return prep


# ----------------------------------------------------------------------------
# Forward pass (mirrors MSResAttnRefineV2Base.forward).
# ----------------------------------------------------------------------------
def forward(prep, coarse_img, coarse_seg, neighbors_img, neighbors_seg):
    img1 = neighbors_img[..., :3]
    img2 = neighbors_img[..., 3:6]
    seg1 = neighbors_seg[..., :20]
    seg2 = neighbors_seg[..., 20:40]

    x_comb = jnp.concatenate([coarse_img, coarse_seg], axis=-1)     # 23 ch
    for_comb = jnp.concatenate([img1, seg1], axis=-1)
    back_comb = jnp.concatenate([img2, seg2], axis=-1)
    bsz = x_comb.shape[0]

    # One batched pass over the three encoder streams (3x fewer launches,
    # 3x bigger matmul M per layer).
    stacked = jnp.concatenate([x_comb, for_comb, back_comb], axis=0)
    l0 = run_block(prep["input_layer"], stacked)
    e1 = run_block(prep["encoder_layer_1"], l0)
    e2 = run_block(prep["encoder_layer_2"], e1)
    e3 = run_block(prep["encoder_layer_3"], e2)
    feats = [e3, e2, e1]

    fused_prev = None
    outputs = []
    for i in range(3):
        f = feats[i]
        x_f, for_f, back_f = f[:bsz], f[bsz:2 * bsz], f[2 * bsz:]
        if i != 0:
            tf = prep["layer_{}_neighbor_tf".format(3 - i)]
            nb = run_block(tf, jnp.concatenate([for_f, back_f], axis=0))
            for_f, back_f = nb[:bsz], nb[bsz:]
        neighbors_weighted = for_f + back_f
        # fuse block: concat fused in-kernel via split weights; residual add
        # fused into the epilogue.
        fused = run_block(prep["layer_{}_fuse".format(3 - i)],
                          [x_f, neighbors_weighted],
                          residual=fused_prev if i != 0 else None)
        if i != 2:
            dname = "decoder_layer_{}".format(3 - i)
            dp = prep[dname + ".deconv"]
            up = _depth_to_space2(run_block(dp, fused), dp["deconv_cout"])
            fused_prev = run_block(prep[dname + ".tail"], up)
        op = prep["out_layer_{}".format(3 - i)]
        outputs.append(run_block(op, fused)[..., :op["slice_c"]])
    return outputs, None


# ----------------------------------------------------------------------------
if __name__ == "__main__":
    key = jax.random.PRNGKey(0)
    kp, k1, k2, k3, k4 = jax.random.split(key, 5)
    raw = make_params(kp)
    prep = prepare_params(raw)

    B, H, W = 2, 16, 16
    coarse_img = jax.random.normal(k1, (B, H, W, 3), jnp.float32)
    coarse_seg = jax.random.normal(k2, (B, H, W, 20), jnp.float32)
    neighbors_img = jax.random.normal(k3, (B, H, W, 6), jnp.float32)
    neighbors_seg = jax.random.normal(k4, (B, H, W, 40), jnp.float32)

    def _to_np(a):
        return np.asarray(jnp.asarray(a, jnp.float32))

    def _ref_conv(x, w, b, stride=1, leaky=True, out_bf16=True):
        y = jax.lax.conv_general_dilated(
            x.astype(jnp.bfloat16), jnp.asarray(w, jnp.bfloat16),
            (stride, stride), padding=((1, 1), (1, 1)),
            dimension_numbers=("NHWC", "HWIO", "NHWC"),
            preferred_element_type=jnp.float32) + jnp.asarray(b, jnp.float32)
        if leaky:
            y = _leaky_f32(y)
        return y.astype(jnp.bfloat16) if out_bf16 else y

    # ----------------- correctness spot checks vs XLA references ------------
    # 1) input_layer: two fused 3x3 convs.
    x0 = jnp.concatenate([coarse_img, coarse_seg], axis=-1)
    ref = x0
    for layer in raw["input_layer"]:
        ref = _ref_conv(ref, layer["w"], layer["b"])
    got = run_block(prep["input_layer"], x0)
    np.testing.assert_allclose(_to_np(ref), _to_np(got), atol=5e-2, rtol=5e-2)

    # 2) encoder_layer_2: stride-2 conv + two 3x3 convs fused.
    x1 = jax.random.normal(jax.random.PRNGKey(7), (B, H, W, 32), jnp.float32)
    ref = _ref_conv(x1, raw["encoder_layer_2"][0]["w"],
                    raw["encoder_layer_2"][0]["b"], stride=2)
    for layer in raw["encoder_layer_2"][1:]:
        ref = _ref_conv(ref, layer["w"], layer["b"])
    got = run_block(prep["encoder_layer_2"], x1)
    np.testing.assert_allclose(_to_np(ref), _to_np(got), atol=5e-2, rtol=5e-2)

    # 3) decoder_layer_3 transposed conv: 4-phase decomposition + depth-to-space.
    x2 = jax.random.normal(jax.random.PRNGKey(11), (B, 4, 4, 128), jnp.float32)
    wt = raw["decoder_layer_3"][0]["w"]
    bt = raw["decoder_layer_3"][0]["b"]
    w_conv = jnp.transpose(wt[:, :, ::-1, ::-1], (2, 3, 0, 1))       # (4,4,Ci,Co)
    ref = jax.lax.conv_general_dilated(
        x2.astype(jnp.bfloat16), w_conv.astype(jnp.bfloat16), (1, 1),
        padding=((2, 2), (2, 2)), lhs_dilation=(2, 2),
        dimension_numbers=("NHWC", "HWIO", "NHWC"),
        preferred_element_type=jnp.float32) + bt
    ref = _leaky_f32(ref).astype(jnp.bfloat16)
    dp = prep["decoder_layer_3.deconv"]
    got = _depth_to_space2(run_block(dp, x2), dp["deconv_cout"])
    np.testing.assert_allclose(_to_np(ref), _to_np(got), atol=5e-2, rtol=5e-2)

    # 4) layer_2_fuse: split-weight 2-input conv0 + fused residual add.
    xa = jax.random.normal(jax.random.PRNGKey(13), (B, 8, 8, 64), jnp.float32)
    xb = jax.random.normal(jax.random.PRNGKey(17), (B, 8, 8, 64), jnp.float32)
    rs = jax.random.normal(jax.random.PRNGKey(19), (B, 8, 8, 64), jnp.float32)
    ref = jnp.concatenate([xa, xb], axis=-1)
    for layer in raw["layer_2_fuse"]:
        ref = _ref_conv(ref, layer["w"], layer["b"])
    ref = (ref.astype(jnp.float32) + rs).astype(jnp.bfloat16)
    got = run_block(prep["layer_2_fuse"], [xa, xb], residual=rs)
    np.testing.assert_allclose(_to_np(ref), _to_np(got), atol=5e-2, rtol=5e-2)

    # 5) out_layer_1: final conv padded 3->8, no activation, f32 out.
    x3 = jax.random.normal(jax.random.PRNGKey(23), (B, H, W, 32), jnp.float32)
    ref = x3
    for li, layer in enumerate(raw["out_layer_1"]):
        ref = _ref_conv(ref, layer["w"], layer["b"],
                        leaky=(li < 2), out_bf16=(li < 2))
    got = run_block(prep["out_layer_1"], x3)[..., :3]
    np.testing.assert_allclose(_to_np(ref), _to_np(got), atol=5e-2, rtol=5e-2)

    # ----------------- full forward ------------------------------------------
    fwd = jax.jit(lambda a, b, c, d: forward(prep, a, b, c, d))
    outputs, _ = fwd(coarse_img, coarse_seg, neighbors_img, neighbors_seg)
    outputs = [jax.block_until_ready(o) for o in outputs]

    expected = [(B, H // 4, W // 4, 3), (B, H // 2, W // 2, 3), (B, H, W, 3)]
    assert [tuple(o.shape) for o in outputs] == expected, \
        [tuple(o.shape) for o in outputs]
    assert all(bool(jnp.isfinite(o).all()) for o in outputs)
    print("KERNEL_OK")
</pallas_src>

<mosaic_0001>
module attributes {stable_mosaic.version = 11 : i64} {
  func.func @_fused_block_kernel(%arg0: i32, %arg1: memref<1x18x16x128xbf16, #tpu.memory_space<vmem>>, %arg2: memref<3x128x32xbf16, #tpu.memory_space<vmem>>, %arg3: memref<1x32xf32, #tpu.memory_space<vmem>>, %arg4: memref<3x96x32xbf16, #tpu.memory_space<vmem>>, %arg5: memref<1x32xf32, #tpu.memory_space<vmem>>, %arg6: memref<1x16x16x32xbf16, #tpu.memory_space<vmem>>, %arg7: memref<1x18x16x96xbf16, #tpu.memory_space<vmem>>) attributes {dimension_semantics = [#tpu.dimension_semantics<parallel>], iteration_bounds = array<i64: 2>, scalar_prefetch = 0 : i64, scratch_operands = 1 : i64, tpu.core_type = #tpu.core_type<tc>, window_params = [{transform_indices = @transform_0, window_bounds = array<i64: 1, 18, 16, 128>}, {pipeline_mode = #tpu.pipeline_mode<synchronous>, transform_indices = @transform_1, window_bounds = array<i64: 3, 128, 32>}, {pipeline_mode = #tpu.pipeline_mode<synchronous>, transform_indices = @transform_2, window_bounds = array<i64: 1, 32>}, {pipeline_mode = #tpu.pipeline_mode<synchronous>, transform_indices = @transform_3, window_bounds = array<i64: 3, 96, 32>}, {pipeline_mode = #tpu.pipeline_mode<synchronous>, transform_indices = @transform_4, window_bounds = array<i64: 1, 32>}, {transform_indices = @transform_5, window_bounds = array<i64: 1, 16, 16, 32>}]} {
    %cst = arith.constant 0.000000e+00 : f32
    %0 = vector.broadcast %cst : f32 to vector<256x32xf32>
    %c0 = arith.constant 0 : index
    %c0_0 = arith.constant 0 : index
    %c0_1 = arith.constant 0 : index
    %c0_2 = arith.constant 0 : index
    %1 = vector.load %arg1[%c0, %c0_0, %c0_1, %c0_2] : memref<1x18x16x128xbf16, #tpu.memory_space<vmem>>, vector<1x16x16x128xbf16>
    %2 = vector.shape_cast %1 : vector<1x16x16x128xbf16> to vector<256x128xbf16>
    %c0_3 = arith.constant 0 : index
    %c0_4 = arith.constant 0 : index
    %c0_5 = arith.constant 0 : index
    %3 = vector.load %arg2[%c0_3, %c0_4, %c0_5] : memref<3x128x32xbf16, #tpu.memory_space<vmem>>, vector<1x128x32xbf16>
    %4 = vector.shape_cast %3 : vector<1x128x32xbf16> to vector<128x32xbf16>
    %cst_6 = arith.constant dense<0.000000e+00> : vector<256x32xf32>
    %5 = tpu.matmul %2, %4, %cst_6 {dimension_numbers = #tpu.dot_dimension_numbers<[1], [0], [0], [1], [0, 0, 1, 1], [], []>} : vector<256x128xbf16>, vector<128x32xbf16>, vector<256x32xf32> -> vector<256x32xf32>
    %6 = arith.addf %0, %5 : vector<256x32xf32>
    %c0_7 = arith.constant 0 : index
    %c1 = arith.constant 1 : index
    %c0_8 = arith.constant 0 : index
    %c0_9 = arith.constant 0 : index
    %7 = vector.load %arg1[%c0_7, %c1, %c0_8, %c0_9] : memref<1x18x16x128xbf16, #tpu.memory_space<vmem>>, vector<1x16x16x128xbf16>
    %8 = vector.shape_cast %7 : vector<1x16x16x128xbf16> to vector<256x128xbf16>
    %c1_10 = arith.constant 1 : index
    %c0_11 = arith.constant 0 : index
    %c0_12 = arith.constant 0 : index
    %9 = vector.load %arg2[%c1_10, %c0_11, %c0_12] : memref<3x128x32xbf16, #tpu.memory_space<vmem>>, vector<1x128x32xbf16>
    %10 = vector.shape_cast %9 : vector<1x128x32xbf16> to vector<128x32xbf16>
    %cst_13 = arith.constant dense<0.000000e+00> : vector<256x32xf32>
    %11 = tpu.matmul %8, %10, %cst_13 {dimension_numbers = #tpu.dot_dimension_numbers<[1], [0], [0], [1], [0, 0, 1, 1], [], []>} : vector<256x128xbf16>, vector<128x32xbf16>, vector<256x32xf32> -> vector<256x32xf32>
    %12 = arith.addf %6, %11 : vector<256x32xf32>
    %c0_14 = arith.constant 0 : index
    %c2 = arith.constant 2 : index
    %c0_15 = arith.constant 0 : index
    %c0_16 = arith.constant 0 : index
    %13 = vector.load %arg1[%c0_14, %c2, %c0_15, %c0_16] : memref<1x18x16x128xbf16, #tpu.memory_space<vmem>>, vector<1x16x16x128xbf16>
    %14 = vector.shape_cast %13 : vector<1x16x16x128xbf16> to vector<256x128xbf16>
    %c2_17 = arith.constant 2 : index
    %c0_18 = arith.constant 0 : index
    %c0_19 = arith.constant 0 : index
    %15 = vector.load %arg2[%c2_17, %c0_18, %c0_19] : memref<3x128x32xbf16, #tpu.memory_space<vmem>>, vector<1x128x32xbf16>
    %16 = vector.shape_cast %15 : vector<1x128x32xbf16> to vector<128x32xbf16>
    %cst_20 = arith.constant dense<0.000000e+00> : vector<256x32xf32>
    %17 = tpu.matmul %14, %16, %cst_20 {dimension_numbers = #tpu.dot_dimension_numbers<[1], [0], [0], [1], [0, 0, 1, 1], [], []>} : vector<256x128xbf16>, vector<128x32xbf16>, vector<256x32xf32> -> vector<256x32xf32>
    %18 = arith.addf %12, %17 : vector<256x32xf32>
    %c0_21 = arith.constant 0 : index
    %c0_22 = arith.constant 0 : index
    %19 = vector.load %arg3[%c0_21, %c0_22] : memref<1x32xf32, #tpu.memory_space<vmem>>, vector<1x32xf32>
    %20 = vector.broadcast %19 : vector<1x32xf32> to vector<256x32xf32>
    %21 = arith.addf %18, %20 : vector<256x32xf32>
    %cst_23 = arith.constant 0.000000e+00 : f32
    %22 = vector.broadcast %cst_23 : f32 to vector<256x32xf32>
    %23 = arith.cmpf oge, %21, %22 : vector<256x32xf32>
    %cst_24 = arith.constant 2.000000e-01 : f32
    %24 = vector.broadcast %cst_24 : f32 to vector<256x32xf32>
    %25 = arith.mulf %24, %21 : vector<256x32xf32>
    %26 = arith.select %23, %21, %25 : vector<256x32xi1>, vector<256x32xf32>
    %cst_25 = arith.constant 0.000000e+00 : bf16
    %27 = vector.broadcast %cst_25 : bf16 to vector<1x1x16x96xbf16>
    %c0_26 = arith.constant 0 : index
    %c0_27 = arith.constant 0 : index
    %c0_28 = arith.constant 0 : index
    %c0_29 = arith.constant 0 : index
    %28 = vector.load %arg7[%c0_26, %c0_27, %c0_28, %c0_29] : memref<1x18x16x96xbf16, #tpu.memory_space<vmem>>, vector<1x1x16x96xbf16>
    tpu.vector_store %arg7[%c0_26, %c0_27, %c0_28, %c0_29], %27 {strides = array<i32>} : memref<1x18x16x96xbf16, #tpu.memory_space<vmem>>, vector<1x1x16x96xbf16>,
    %cst_30 = arith.constant 0.000000e+00 : bf16
    %29 = vector.broadcast %cst_30 : bf16 to vector<1x1x16x96xbf16>
    %c0_31 = arith.constant 0 : index
    %c17 = arith.constant 17 : index
    %c0_32 = arith.constant 0 : index
    %c0_33 = arith.constant 0 : index
    %30 = vector.load %arg7[%c0_31, %c17, %c0_32, %c0_33] : memref<1x18x16x96xbf16, #tpu.memory_space<vmem>>, vector<1x1x16x96xbf16>
    tpu.vector_store %arg7[%c0_31, %c17, %c0_32, %c0_33], %29 {strides = array<i32>} : memref<1x18x16x96xbf16, #tpu.memory_space<vmem>>, vector<1x1x16x96xbf16>,
    %31 = vector.shape_cast %26 : vector<256x32xf32> to vector<1x16x16x32xf32>
    %32 = arith.truncf %31 : vector<1x16x16x32xf32> to vector<1x16x16x32xbf16>
    %cst_34 = arith.constant 0.000000e+00 : bf16
    %33 = vector.broadcast %cst_34 : bf16 to vector<1x16x1x32xbf16>
    %c0_35 = arith.constant 0 : index
    %c1_36 = arith.constant 1 : index
    %c0_37 = arith.constant 0 : index
    %c0_38 = arith.constant 0 : index
    %34 = vector.load %arg7[%c0_35, %c1_36, %c0_37, %c0_38] : memref<1x18x16x96xbf16, #tpu.memory_space<vmem>>, vector<1x16x1x32xbf16>
    tpu.vector_store %arg7[%c0_35, %c1_36, %c0_37, %c0_38], %33 {strides = array<i32>} : memref<1x18x16x96xbf16, #tpu.memory_space<vmem>>, vector<1x16x1x32xbf16>,
    %c0_39 = arith.constant 0 : index
    %c1_40 = arith.constant 1 : index
    %c15 = arith.constant 15 : index
    %c64 = arith.constant 64 : index
    %35 = vector.load %arg7[%c0_39, %c1_40, %c15, %c64] : memref<1x18x16x96xbf16, #tpu.memory_space<vmem>>, vector<1x16x1x32xbf16>
    tpu.vector_store %arg7[%c0_39, %c1_40, %c15, %c64], %33 {strides = array<i32>} : memref<1x18x16x96xbf16, #tpu.memory_space<vmem>>, vector<1x16x1x32xbf16>,
    %36 = vector.extract_strided_slice %32 {offsets = [0, 0, 0, 0], sizes = [1, 16, 15, 32], strides = [1, 1, 1, 1]} : vector<1x16x16x32xbf16> to vector<1x16x15x32xbf16>
    %c0_41 = arith.constant 0 : index
    %c1_42 = arith.constant 1 : index
    %c1_43 = arith.constant 1 : index
    %c0_44 = arith.constant 0 : index
    %37 = vector.load %arg7[%c0_41, %c1_42, %c1_43, %c0_44] : memref<1x18x16x96xbf16, #tpu.memory_space<vmem>>, vector<1x16x15x32xbf16>
    tpu.vector_store %arg7[%c0_41, %c1_42, %c1_43, %c0_44], %36 {strides = array<i32>} : memref<1x18x16x96xbf16, #tpu.memory_space<vmem>>, vector<1x16x15x32xbf16>,
    %c0_45 = arith.constant 0 : index
    %c1_46 = arith.constant 1 : index
    %c0_47 = arith.constant 0 : index
    %c32 = arith.constant 32 : index
    %38 = vector.load %arg7[%c0_45, %c1_46, %c0_47, %c32] : memref<1x18x16x96xbf16, #tpu.memory_space<vmem>>, vector<1x16x16x32xbf16>
    tpu.vector_store %arg7[%c0_45, %c1_46, %c0_47, %c32], %32 {strides = array<i32>} : memref<1x18x16x96xbf16, #tpu.memory_space<vmem>>, vector<1x16x16x32xbf16>,
    %39 = vector.extract_strided_slice %32 {offsets = [0, 0, 1, 0], sizes = [1, 16, 15, 32], strides = [1, 1, 1, 1]} : vector<1x16x16x32xbf16> to vector<1x16x15x32xbf16>
    %c0_48 = arith.constant 0 : index
    %c1_49 = arith.constant 1 : index
    %c0_50 = arith.constant 0 : index
    %c64_51 = arith.constant 64 : index
    %40 = vector.load %arg7[%c0_48, %c1_49, %c0_50, %c64_51] : memref<1x18x16x96xbf16, #tpu.memory_space<vmem>>, vector<1x16x15x32xbf16>
    tpu.vector_store %arg7[%c0_48, %c1_49, %c0_50, %c64_51], %39 {strides = array<i32>} : memref<1x18x16x96xbf16, #tpu.memory_space<vmem>>, vector<1x16x15x32xbf16>,
    %cst_52 = arith.constant 0.000000e+00 : f32
    %41 = vector.broadcast %cst_52 : f32 to vector<256x32xf32>
    %c0_53 = arith.constant 0 : index
    %c0_54 = arith.constant 0 : index
    %c0_55 = arith.constant 0 : index
    %c0_56 = arith.constant 0 : index
    %42 = vector.load %arg7[%c0_53, %c0_54, %c0_55, %c0_56] : memref<1x18x16x96xbf16, #tpu.memory_space<vmem>>, vector<1x16x16x96xbf16>
    %43 = vector.shape_cast %42 : vector<1x16x16x96xbf16> to vector<256x96xbf16>
    %c0_57 = arith.constant 0 : index
    %c0_58 = arith.constant 0 : index
    %c0_59 = arith.constant 0 : index
    %44 = vector.load %arg4[%c0_57, %c0_58, %c0_59] : memref<3x96x32xbf16, #tpu.memory_space<vmem>>, vector<1x96x32xbf16>
    %45 = vector.shape_cast %44 : vector<1x96x32xbf16> to vector<96x32xbf16>
    %cst_60 = arith.constant dense<0.000000e+00> : vector<256x32xf32>
    %46 = tpu.matmul %43, %45, %cst_60 {dimension_numbers = #tpu.dot_dimension_numbers<[1], [0], [0], [1], [0, 0, 1, 1], [], []>} : vector<256x96xbf16>, vector<96x32xbf16>, vector<256x32xf32> -> vector<256x32xf32>
    %47 = arith.addf %41, %46 : vector<256x32xf32>
    %c0_61 = arith.constant 0 : index
    %c1_62 = arith.constant 1 : index
    %c0_63 = arith.constant 0 : index
    %c0_64 = arith.constant 0 : index
    %48 = vector.load %arg7[%c0_61, %c1_62, %c0_63, %c0_64] : memref<1x18x16x96xbf16, #tpu.memory_space<vmem>>, vector<1x16x16x96xbf16>
    %49 = vector.shape_cast %48 : vector<1x16x16x96xbf16> to vector<256x96xbf16>
    %c1_65 = arith.constant 1 : index
    %c0_66 = arith.constant 0 : index
    %c0_67 = arith.constant 0 : index
    %50 = vector.load %arg4[%c1_65, %c0_66, %c0_67] : memref<3x96x32xbf16, #tpu.memory_space<vmem>>, vector<1x96x32xbf16>
    %51 = vector.shape_cast %50 : vector<1x96x32xbf16> to vector<96x32xbf16>
    %cst_68 = arith.constant dense<0.000000e+00> : vector<256x32xf32>
    %52 = tpu.matmul %49, %51, %cst_68 {dimension_numbers = #tpu.dot_dimension_numbers<[1], [0], [0], [1], [0, 0, 1, 1], [], []>} : vector<256x96xbf16>, vector<96x32xbf16>, vector<256x32xf32> -> vector<256x32xf32>
    %53 = arith.addf %47, %52 : vector<256x32xf32>
    %c0_69 = arith.constant 0 : index
    %c2_70 = arith.constant 2 : index
    %c0_71 = arith.constant 0 : index
    %c0_72 = arith.constant 0 : index
    %54 = vector.load %arg7[%c0_69, %c2_70, %c0_71, %c0_72] : memref<1x18x16x96xbf16, #tpu.memory_space<vmem>>, vector<1x16x16x96xbf16>
    %55 = vector.shape_cast %54 : vector<1x16x16x96xbf16> to vector<256x96xbf16>
    %c2_73 = arith.constant 2 : index
    %c0_74 = arith.constant 0 : index
    %c0_75 = arith.constant 0 : index
    %56 = vector.load %arg4[%c2_73, %c0_74, %c0_75] : memref<3x96x32xbf16, #tpu.memory_space<vmem>>, vector<1x96x32xbf16>
    %57 = vector.shape_cast %56 : vector<1x96x32xbf16> to vector<96x32xbf16>
    %cst_76 = arith.constant dense<0.000000e+00> : vector<256x32xf32>
    %58 = tpu.matmul %55, %57, %cst_76 {dimension_numbers = #tpu.dot_dimension_numbers<[1], [0], [0], [1], [0, 0, 1, 1], [], []>} : vector<256x96xbf16>, vector<96x32xbf16>, vector<256x32xf32> -> vector<256x32xf32>
    %59 = arith.addf %53, %58 : vector<256x32xf32>
    %c0_77 = arith.constant 0 : index
    %c0_78 = arith.constant 0 : index
    %60 = vector.load %arg5[%c0_77, %c0_78] : memref<1x32xf32, #tpu.memory_space<vmem>>, vector<1x32xf32>
    %61 = vector.broadcast %60 : vector<1x32xf32> to vector<256x32xf32>
    %62 = arith.addf %59, %61 : vector<256x32xf32>
    %cst_79 = arith.constant 0.000000e+00 : f32
    %63 = vector.broadcast %cst_79 : f32 to vector<256x32xf32>
    %64 = arith.cmpf oge, %62, %63 : vector<256x32xf32>
    %cst_80 = arith.constant 2.000000e-01 : f32
    %65 = vector.broadcast %cst_80 : f32 to vector<256x32xf32>
    %66 = arith.mulf %65, %62 : vector<256x32xf32>
    %67 = arith.select %64, %62, %66 : vector<256x32xi1>, vector<256x32xf32>
    %68 = vector.shape_cast %67 : vector<256x32xf32> to vector<1x16x16x32xf32>
    %69 = arith.truncf %68 : vector<1x16x16x32xf32> to vector<1x16x16x32xbf16>
    %c0_81 = arith.constant 0 : index
    %c0_82 = arith.constant 0 : index
    %c0_83 = arith.constant 0 : index
    %c0_84 = arith.constant 0 : index
    %70 = vector.load %arg6[%c0_81, %c0_82, %c0_83, %c0_84] : memref<1x16x16x32xbf16, #tpu.memory_space<vmem>>, vector<1x16x16x32xbf16>
    tpu.vector_store %arg6[%c0_81, %c0_82, %c0_83, %c0_84], %69 {strides = array<i32>} : memref<1x16x16x32xbf16, #tpu.memory_space<vmem>>, vector<1x16x16x32xbf16>,
    return
  }
  func.func @transform_0(%arg0: i32) -> (i32, i32, i32, i32) {
    %c0_i32 = arith.constant 0 : i32
    %c0_i32_0 = arith.constant 0 : i32
    %c0_i32_1 = arith.constant 0 : i32
    %c0_i32_2 = arith.constant 0 : i32
    return %arg0, %c0_i32, %c0_i32_0, %c0_i32_1 : i32, i32, i32, i32
  }
  func.func @transform_1(%arg0: i32) -> (i32, i32, i32) {
    %c0_i32 = arith.constant 0 : i32
    %c0_i32_0 = arith.constant 0 : i32
    %c0_i32_1 = arith.constant 0 : i32
    %c0_i32_2 = arith.constant 0 : i32
    return %c0_i32, %c0_i32_0, %c0_i32_1 : i32, i32, i32
  }
  func.func @transform_2(%arg0: i32) -> (i32, i32) {
    %c0_i32 = arith.constant 0 : i32
    %c0_i32_0 = arith.constant 0 : i32
    %c0_i32_1 = arith.constant 0 : i32
    return %c0_i32, %c0_i32_0 : i32, i32
  }
  func.func @transform_3(%arg0: i32) -> (i32, i32, i32) {
    %c0_i32 = arith.constant 0 : i32
    %c0_i32_0 = arith.constant 0 : i32
    %c0_i32_1 = arith.constant 0 : i32
    %c0_i32_2 = arith.constant 0 : i32
    return %c0_i32, %c0_i32_0, %c0_i32_1 : i32, i32, i32
  }
  func.func @transform_4(%arg0: i32) -> (i32, i32) {
    %c0_i32 = arith.constant 0 : i32
    %c0_i32_0 = arith.constant 0 : i32
    %c0_i32_1 = arith.constant 0 : i32
    return %c0_i32, %c0_i32_0 : i32, i32
  }
  func.func @transform_5(%arg0: i32) -> (i32, i32, i32, i32) {
    %c0_i32 = arith.constant 0 : i32
    %c0_i32_0 = arith.constant 0 : i32
    %c0_i32_1 = arith.constant 0 : i32
    %c0_i32_2 = arith.constant 0 : i32
    return %arg0, %c0_i32, %c0_i32_0, %c0_i32_1 : i32, i32, i32, i32
  }
}

</mosaic_0001>

<bundles_post_ra>
// kernel: tpu_custom_call.1
= control target key start
LH: loop header
LB: loop body
LE: loop exit
PB: predicated region body
PF: predicated region fallthrough
CT: control target
= control target key end

     0   :  { %10 = vsyncpa [#allocation4], 0  ;;  %s5129_s0 = inlined_call_operand.vmem [shape: bf16[2,18,16,128], index: 0, kind: input, shape index: {}]   ;;  %s5130_s1 = inlined_call_operand.vmem [shape: bf16[3,128,32], index: 1, kind: input, shape index: {}]   ;;  %s5131_s2 = inlined_call_operand.vmem [shape: f32[1,32], index: 2, kind: input, shape index: {}]   ;;  %s5132_s3 = inlined_call_operand.vmem [shape: bf16[3,96,32], index: 3, kind: input, shape index: {}]   ;;  %s5133_s4 = inlined_call_operand.vmem [shape: f32[1,32], index: 4, kind: input, shape index: {}]   ;;  %s5134_s5 = inlined_call_operand.hbm [shape: bf16[2,16,16,32], index: 5, kind: output, shape index: {}]  }
   0x1   :  { %12 = vsyncpa [#allocation4 + $0x1], 0  ;;  %s4305_s18 = smov 0   ;;  %s4307_s19 = smov 0  }
   0x2   :  { %s4309_s20 = smov 0   ;;  %s4311_s21 = smov 0  }
   0x3 LB: > { %s4326_s22 = sadd.s32 4294967295, %s4268_s21   ;;  %s3194_s23 = sadd.s32 4294967294, %s4268_s21   ;;  %s4268_s21 = sphi %s4311_s21, %s5148_s21   ;;  %s4264_s20 = sphi %s4309_s20, %s5147_s20   ;;  %s4260_s19 = sphi %s4307_s19, %s5146_s19   ;;  %s4256_s18 = sphi %s4305_s18, %s5145_s18  }
   0x4   : > { %s4330_s24 = sadd.s32 1, %s4268_s21   ;;  %s135_s25 = sadd.s32 1, %s4264_s20 }
   0x5   : > { %s132_s26 = ssub.s32 %s4268_s21, %s4330_s24  ;;  %p145_p0 = scmp.ne.s32.totalorder %s4264_s20, %s4260_s19 }
   0x6   : > { %p133_p1 = scmp.eq.s32.totalorder %s132_s26, 0  ;;  %p146_p2 = scmp.eq.s32.totalorder %s4326_s22, 1 }
   0x7   : > { %p151_p3 = scmp.ne.s32.totalorder %s4260_s19, %s4256_s18  ;;  %p152_p4 = scmp.eq.s32.totalorder %s3194_s23, 1 }
   0x8   : > { %s4341_s27 = scalar_select %p133_p1, %s4264_s20, %s135_s25  }
   0x9   : > { %p4343_p5 = por %p146_p2, %p145_p0  ;;  %p4347_p6 = por %p152_p4, %p151_p3 }
   0xa   : > { %p3197_p7 = scmp.ge.s32.totalorder %s4268_s21, 1  ;;  %p190_p8 = scmp.lt.s32.totalorder %s4268_s21, 3 }
   0xc   : > { %p191_p9 = pnand %p3197_p7, %p190_p8 }
   0xd   : > { %v4116_v0 = vld [vmem:[%s5130_s1 + $0x40] sm:$0xff] (!%p191_p9)   ;;  %p218_p10 = scmp.lt.s32.totalorder (!%p191_p9), %s4326_s22, 1  ;;  %v4117_v1 = vld [vmem:[%s5130_s1 + $0x48] sm:$0xff] (!%p191_p9)   ;;  %v4118_v2 = vld [vmem:[%s5130_s1 + $0x50] sm:$0xff] (!%p191_p9)   ;;  %vm1475_vm0 = vcmask (!%p191_p9), 253952   ;;  %vm1526_vm2 = vcmask (!%p191_p9), 785927  }
   0xe   : > { %194 = sbr.rel (%p191_p9) target bundleno = 948 (0x3b4), region = 40  ;;  %3668 = vmatprep.subr.bf16.mxu0 (!%p191_p9), %v4116_v0  ;;  %v4119_v3 = vld [vmem:[%s5130_s1 + $0x58] sm:$0xff] (!%p191_p9)   ;;  %v4120_v5 = vld [vmem:[%s5130_s1 + $0x60] sm:$0xff] (!%p191_p9)   ;;  %v4121_v6 = vld [vmem:[%s5130_s1 + $0x68] sm:$0xff] (!%p191_p9)   ;;  %vm1476_vm1 = vsmask.f32 (!%p191_p9), 256 }
   0xf   : > { %3669 = vmatpush3.bf16.msra.mxu0 (!%p191_p9), %v4116_v0  ;;  %v4122_v7 = vld [vmem:[%s5130_s1 + $0x70] sm:$0xff] (!%p191_p9)   ;;  %v4123_v8 = vld [vmem:[%s5130_s1 + $0x78] sm:$0xff] (!%p191_p9)   ;;  %v4126_v9 = vld [vmem:[%s5130_s1] sm:$0xff] (!%p191_p9)   ;;  %vm1527_vm3 = vsmask.f32 (!%p191_p9), 7966  ;;  %vm1705_vm10 = vcmask (!%p191_p9), 261120  }
  0x10   : > { %3670 = vmatprep.subr.bf16.mxu0 (!%p191_p9), %v4117_v1  ;;  %v4129_v12 = vld [vmem:[%s5130_s1 + $0x8] sm:$0xff] (!%p191_p9)   ;;  %v4132_v13 = vld [vmem:[%s5130_s1 + $0x10] sm:$0xff] (!%p191_p9)   ;;  %v4135_v16 = vld [vmem:[%s5130_s1 + $0x18] sm:$0xff] (!%p191_p9)   ;;  %vm1706_vm11 = vsmask.f32 (!%p191_p9), 7938  ;;  %s4270_s6 = smov (!%p191_p9), 32  }
  0x11   : > { %v4138_v17 = vld [vmem:[%s5130_s1 + $0x20] sm:$0xff] (!%p191_p9)   ;;  %v4141_v20 = vld [vmem:[%s5130_s1 + $0x28] sm:$0xff] (!%p191_p9)   ;;  %v4144_v21 = vld [vmem:[%s5130_s1 + $0x30] sm:$0xff] (!%p191_p9)   ;;  %s4271_s11 = smov (!%p191_p9), 64   ;;  %s215_s7 = sand.u32 (!%p191_p9), 1, %s4260_s19  }
  0x12   : > { %v4147_v24 = vld [vmem:[%s5130_s1 + $0x38] sm:$0xff] (!%p191_p9)   ;;  %v4150_v25 = vld [vmem:[%s5130_s1 + $0x80] sm:$0xff] (!%p191_p9)   ;;  %v4153_v36 = vld [vmem:[%s5130_s1 + $0x88] sm:$0xff] (!%p191_p9)   ;;  %s3198_s8 = sshll.u32 (!%p191_p9), %s215_s7, 7  ;;  %s3529_s10 = sshll.u32 (!%p191_p9), %s4326_s22, 11 }
  0x13   : > { %3671 = vmatpush3.bf16.msra.mxu0 (!%p191_p9), %v4117_v1  ;;  %v4156_v37 = vld [vmem:[%s5130_s1 + $0x90] sm:$0xff] (!%p191_p9)   ;;  %v4159_v40 = vld [vmem:[%s5130_s1 + $0x98] sm:$0xff] (!%p191_p9)   ;;  %v4162_v41 = vld [vmem:[%s5130_s1 + $0xa0] sm:$0xff] (!%p191_p9)   ;;  %s5074_s14 = scalar_lea.hbm (!%p191_p9), %s5134_s5, %s3529_s10  ;;  %s4273_s17 = smov (!%p191_p9), [#allocation3]  }
  0x14   : > { %3672 = vmatprep.subr.bf16.mxu0 (!%p191_p9), %v4118_v2  ;;  %v4165_v44 = vld [vmem:[%s5130_s1 + $0xa8] sm:$0xff] (!%p191_p9)   ;;  %v4168_v45 = vld [vmem:[%s5130_s1 + $0xb0] sm:$0xff] (!%p191_p9)   ;;  %v4171_v48 = vld [vmem:[%s5130_s1 + $0xb8] sm:$0xff] (!%p191_p9)   ;;  %s4210_s23 = sshll.u32 (!%p191_p9), %s4273_s17, 4  ;;  %s4211_s23 = int_to_ptr.vmem [resolvable:$false] %s4210_s23 }
  0x15   : > { %s219_s9 = scalar_select %p218_p10, %s4326_s22, 1  ;;  %vm4480_vm4 = vmand %vm1475_vm0, %vm1476_vm1 }
  0x16   : > { %vm4484_vm5 = vmand %vm1526_vm2, %vm1527_vm3  ;;  %s5086_s22 = scalar_lea.sflag [#allocation4], %s215_s7  ;;  %s4212_s25 = scalar_lea.vmem %s4211_s23, 4096 }
  0x17   : > { %s4072_s12 = smul.u32 144, %s219_s9  ;;  %3673 = vmatpush3.bf16.msra.mxu0 %v4118_v2  ;;  %vm4591_vm0 = vmand %vm1705_vm10, %vm1706_vm11  ;;  %s4981_s9 = scalar_lea.vmem [#allocation3], %s3198_s8 }
  0x18   : > { %3674 = vmatprep.subr.bf16.mxu0 %v4119_v3 }
  0x19   : > { %s4367_s15 = scalar_lea.vmem %s5129_s0, %s4072_s12 }
  0x1a   : > { %v4124_v4 = vld [vmem:[%s4367_s15 + $0x8] sm:$0xff]   ;;  %v4125_v10 = vld [vmem:[%s4367_s15 + $0x10] sm:$0xff]   ;;  %v4127_v11 = vld [vmem:[%s4367_s15 + $0x18] sm:$0xff]  }
  0x1b   : > { %3684 = vmatprep.mubr.bf16.mxu0 %v4124_v4  ;;  %3675 = vmatpush3.bf16.msra.mxu0 %v4119_v3  ;;  %v4128_v14 = vld [vmem:[%s4367_s15 + $0x20] sm:$0xff]   ;;  %v4130_v15 = vld [vmem:[%s4367_s15 + $0x28] sm:$0xff]   ;;  %v4131_v18 = vld [vmem:[%s4367_s15 + $0x30] sm:$0xff]  }
  0x1c   : > { %3676 = vmatprep.subr.bf16.mxu0 %v4120_v5  ;;  %v4133_v19 = vld [vmem:[%s4367_s15 + $0x38] sm:$0xff]   ;;  %v4134_v22 = vld [vmem:[%s4367_s15 + $0x40] sm:$0xff]   ;;  %v4136_v23 = vld [vmem:[%s4367_s15 + $0x48] sm:$0xff]  }
  0x1d   : > { %v4137_v26 = vld [vmem:[%s4367_s15 + $0x50] sm:$0xff]   ;;  %v4139_v27 = vld [vmem:[%s4367_s15 + $0x58] sm:$0xff]   ;;  %v4140_v28 = vld [vmem:[%s4367_s15 + $0x60] sm:$0xff]  }
  0x1e   : > { %v4142_v29 = vld [vmem:[%s4367_s15 + $0x68] sm:$0xff]   ;;  %v4143_v30 = vld [vmem:[%s4367_s15 + $0x70] sm:$0xff]   ;;  %v4145_v31 = vld [vmem:[%s4367_s15 + $0x78] sm:$0xff]  }
  0x1f   : > { %3677 = vmatpush3.bf16.msra.mxu0 %v4120_v5  ;;  %v4146_v32 = vld [vmem:[%s4367_s15 + $0x80] sm:$0xff]   ;;  %v4149_v34 = vld [vmem:[%s4367_s15 + $0x8] sm:$0xff]   ;;  %v4151_v35 = vld [vmem:[%s4367_s15 + $0x10] sm:$0xff]  }
  0x20   : > { %3678 = vmatprep.subr.bf16.mxu0 %v4121_v6  ;;  %v4148_v33 = vld [vmem:[%s4367_s15] sm:$0xff]   ;;  %v4152_v38 = vld [vmem:[%s4367_s15 + $0x18] sm:$0xff]   ;;  %v4155_v42 = vld [vmem:[%s4367_s15 + $0x28] sm:$0xff]  }
  0x21   : > { %v4154_v39 = vld [vmem:[%s4367_s15 + $0x20] sm:$0xff]   ;;  %v4157_v43 = vld [vmem:[%s4367_s15 + $0x30] sm:$0xff]   ;;  %v4158_v46 = vld [vmem:[%s4367_s15 + $0x38] sm:$0xff]  }
  0x22   : > { %v4160_v47 = vld [vmem:[%s4367_s15 + $0x40] sm:$0xff]   ;;  %v4161_v49 = vld [vmem:[%s4367_s15 + $0x48] sm:$0xff]   ;;  %v4163_v50 = vld [vmem:[%s4367_s15 + $0x50] sm:$0xff]  }
  0x23   : > { %3679 = vmatpush3.bf16.msra.mxu0 %v4121_v6  ;;  %v4164_v51 = vld [vmem:[%s4367_s15 + $0x58] sm:$0xff]   ;;  %v4166_v52 = vld [vmem:[%s4367_s15 + $0x60] sm:$0xff]   ;;  %v4167_v53 = vld [vmem:[%s4367_s15 + $0x68] sm:$0xff]  }
  0x24   : > { %3680 = vmatprep.subr.bf16.mxu0 %v4122_v7  ;;  %v4169_v54 = vld [vmem:[%s4367_s15 + $0x70] sm:$0xff]   ;;  %v4170_v55 = vld [vmem:[%s4367_s15 + $0x78] sm:$0xff]   ;;  %v4174_v58 = vld [vmem:[%s4367_s15 + $0x20] sm:$0xff]  }
  0x25   : > { %v4172_v56 = vld [vmem:[%s4367_s15 + $0x10] sm:$0xff]   ;;  %v4173_v57 = vld [vmem:[%s4367_s15 + $0x18] sm:$0xff]   ;;  %v4175_v59 = vld [vmem:[%s4367_s15 + $0x28] sm:$0xff]  }
  0x26   : > { %v4176_v60 = vld [vmem:[%s4367_s15 + $0x30] sm:$0xff]   ;;  %v4177_v61 = vld [vmem:[%s4367_s15 + $0x38] sm:$0xff]   ;;  %v4178_v62 = vld [vmem:[%s4367_s15 + $0x40] sm:$0xff]  }
  0x27   : > { %3681 = vmatpush3.bf16.msra.mxu0 %v4122_v7  ;;  %v4179_v63 = vld [vmem:[%s4367_s15 + $0x48] sm:$0xff]   ;;  %v4180_v0 = vld [vmem:[%s4367_s15 + $0x50] sm:$0xff]   ;;  %v4181_v1 = vld [vmem:[%s4367_s15 + $0x58] sm:$0xff]  }
  0x28   : > { %3682 = vmatprep.subr.bf16.mxu0 %v4123_v8  ;;  %v4182_v2 = vld [vmem:[%s4367_s15 + $0x60] sm:$0xff]   ;;  %v4183_v3 = vld [vmem:[%s4367_s15 + $0x68] sm:$0xff]   ;;  %v4184_v4 = vld [vmem:[%s4367_s15 + $0x70] sm:$0xff]  }
  0x29   : > { %v4185_v5 = vld [vmem:[%s4367_s15 + $0x78] sm:$0xff]   ;;  %v4186_v6 = vld [vmem:[%s4367_s15 + $0x80] sm:$0xff]   ;;  %v4187_v7 = vld [vmem:[%s4367_s15 + $0x88] sm:$0xff]   ;;  %s3132_s15 = sshll.u32 %s4981_s9, 4  ;;  %s5078_s15 = int_to_ptr.vmem [resolvable:$true] %s3132_s15 }
  0x2a   : > { %s4206_s16 = scalar_lea.vmem %s5078_s15, 2048  ;;  %p4213_p0 = scmp.lt.s32.totalorder %s5078_s15, %s4211_s23 }
  0x2b   : > { %3683 = vmatpush3.bf16.msra.mxu0 %v4123_v8  ;;  %v4561_v8 = vld [vmem:[%s5131_s2] ss:$0 sm:$0xff]  ;;  %p4207_p11 = scmp.ne.s32.totalorder %s5078_s15, %s4206_s16  ;;  %p4214_p1 = scmp.lt.s32.totalorder %s4212_s25, %s4206_s16 }
  0x2c   : > { %3716 = vmatprep.subr.bf16.mxu0 %v4126_v9 }
  0x2d   : > { %p4208_p12 = pnand %p4207_p11, %p4343_p5  ;;  %p4215_p2 = por %p4214_p1, %p4213_p0 }
  0x2e   : > { %3685 = vmatmul.mubr.bf16.vlgmr.msra.gmra.mrb[0].mxu0 %v4125_v10  ;;  %v1532_v10 = vld [vmem:[#allocation2 + $0x10] sm:$0x80] }
  0x2f   : > { %3717 = vmatpush3.bf16.msra.mxu0 %v4126_v9  ;;  %3688 = vmatprep.mubr.bf16.mxu0 %v4127_v11  ;;  %v1481_v9 = vld [vmem:[#allocation2 + $0x10] sm:$0x1]  ;;  %v1478_v11 = vld [vmem:[#allocation2 + $0x8] sm:$0x1]  ;;  %p4209_p13 = pneg %p4208_p12 }
  0x30   : > { %3718 = vmatprep.subr.bf16.mxu0 %v4129_v12 }
  0x31   : > { %p4216_p3 = pnand %p4215_p2, %p4209_p13 }
  0x33   : > { %3719 = vmatpush3.bf16.msra.mxu0 %v4129_v12 }
  0x34   : > { %3720 = vmatprep.subr.bf16.mxu0 %v4132_v13 }
  0x36   : > { %3689 = vmatmul.mubr.bf16.gmra.mrb[4].mxu0 %v4128_v14  ;;  %v1482_v14 = vsel %vm4480_vm4, 0, %v1481_v9 }
  0x37   : > { %3692 = vmatprep.mubr.bf16.mxu0 %v4130_v15  ;;  %3721 = vmatpush3.bf16.msra.mxu0 %v4132_v13  ;;  %v1529_v13 = vld [vmem:[#allocation2 + $0x8] sm:$0x80]  ;;  %v1479_v15 = vsel %vm4480_vm4, 0, %v1478_v11  ;;  %1483 = vst [vmem:[#allocation2 + $0x10] sm:$0x1] %v1482_v14  ;;  %v4188_v11 = vld [vmem:[%s5132_s3 + $0x30] sm:$0xff]  }
  0x38   : > { %3722 = vmatprep.subr.bf16.mxu0 %v4135_v16  ;;  %1480 = vst [vmem:[#allocation2 + $0x8] sm:$0x1] %v1479_v15  ;;  %3812 = vmatprep.subr.bf16.mxu1 %v4188_v11 }
  0x39   : > { %3813 = vmatpush3.bf16.msra.mxu1 %v4188_v11 }
  0x3b   : > { %3723 = vmatpush3.bf16.msra.mxu0 %v4135_v16  ;;  %v1530_v16 = vsel %vm4484_vm5, 0, %v1529_v13  ;;  %v4189_v13 = vld [vmem:[%s5132_s3 + $0x38] sm:$0xff]  }
  0x3c   : > { %3724 = vmatprep.subr.bf16.mxu0 %v4138_v17  ;;  %1531 = vst [vmem:[#allocation2 + $0x8] sm:$0x80] %v1530_v16  ;;  %3814 = vmatprep.subr.bf16.mxu1 %v4189_v13 }
  0x3d   : > { %3815 = vmatpush3.bf16.msra.mxu1 %v4189_v13 }
  0x3e   : > { %3693 = vmatmul.mubr.bf16.gmra.mrb[8].mxu0 %v4131_v18  ;;  %v1487_v18 = vld [vmem:[#allocation2 + $0x20] sm:$0x1] }
  0x3f   : > { %3696 = vmatprep.mubr.bf16.mxu0 %v4133_v19  ;;  %3725 = vmatpush3.bf16.msra.mxu0 %v4138_v17  ;;  %v1533_v17 = vsel %vm4484_vm5, 0, %v1532_v10  ;;  %v1538_v19 = vld [vmem:[#allocation2 + $0x20] sm:$0x80] }
  0x40   : > { %3726 = vmatprep.subr.bf16.mxu0 %v4141_v20  ;;  %1534 = vst [vmem:[#allocation2 + $0x10] sm:$0x80] %v1533_v17 }
  0x43   : > { %3727 = vmatpush3.bf16.msra.mxu0 %v4141_v20  ;;  %v1488_v20 = vsel %vm4480_vm4, 0, %v1487_v18 }
  0x44   : > { %3728 = vmatprep.subr.bf16.mxu0 %v4144_v21  ;;  %1489 = vst [vmem:[#allocation2 + $0x20] sm:$0x1] %v1488_v20 }
  0x46   : > { %3697 = vmatmul.mubr.bf16.gmra.mrb[12].mxu0 %v4134_v22  ;;  %v1484_v22 = vld [vmem:[#allocation2 + $0x18] sm:$0x1] }
  0x47   : > { %3700 = vmatprep.mubr.bf16.mxu0 %v4136_v23  ;;  %3729 = vmatpush3.bf16.msra.mxu0 %v4144_v21  ;;  %v1539_v21 = vsel %vm4484_vm5, 0, %v1538_v19  ;;  %v1535_v23 = vld [vmem:[#allocation2 + $0x18] sm:$0x80] }
  0x48   : > { %3730 = vmatprep.subr.bf16.mxu0 %v4147_v24  ;;  %1540 = vst [vmem:[#allocation2 + $0x20] sm:$0x80] %v1539_v21  ;;  %v4190_v21 = vld [vmem:[%s5132_s3 + $0x40] sm:$0xff]  }
  0x49   : > { %3816 = vmatprep.subr.bf16.mxu1 %v4190_v21 }
  0x4a   : > { %3817 = vmatpush3.bf16.msra.mxu1 %v4190_v21 }
  0x4b   : > { %3731 = vmatpush3.bf16.msra.mxu0 %v4147_v24  ;;  %v1485_v24 = vsel %vm4480_vm4, 0, %v1484_v22 }
  0x4c   : > { %3764 = vmatprep.subr.bf16.mxu0 %v4150_v25  ;;  %1486 = vst [vmem:[#allocation2 + $0x18] sm:$0x1] %v1485_v24 }
  0x4e   : > { %3701 = vmatmul.mubr.bf16.gmra.mrb[16].mxu0 %v4137_v26  ;;  %v1493_v26 = vld [vmem:[#allocation2 + $0x30] sm:$0x1] }
  0x4f   : > { %3704 = vmatprep.mubr.bf16.mxu0 %v4139_v27  ;;  %v1544_v27 = vld [vmem:[#allocation2 + $0x30] sm:$0x80] }
  0x56   : > { %3705 = vmatmul.mubr.bf16.gmra.mrb[20].mxu0 %v4140_v28  ;;  %v1490_v28 = vld [vmem:[#allocation2 + $0x28] sm:$0x1] }
  0x57   : > { %3708 = vmatprep.mubr.bf16.mxu0 %v4142_v29  ;;  %v1541_v29 = vld [vmem:[#allocation2 + $0x28] sm:$0x80] }
  0x5e   : > { %3709 = vmatmul.mubr.bf16.gmra.mrb[24].mxu0 %v4143_v30  ;;  %v1494_v30 = vsel %vm4480_vm4, 0, %v1493_v26 }
  0x5f   : > { %3712 = vmatprep.mubr.bf16.mxu0 %v4145_v31  ;;  %v1491_v31 = vsel %vm4480_vm4, 0, %v1490_v28  ;;  %1495 = vst [vmem:[#allocation2 + $0x30] sm:$0x1] %v1494_v30  ;;  %v4191_v28 = vld [vmem:[%s5132_s3 + $0x48] sm:$0xff]  }
  0x60   : > { %1492 = vst [vmem:[#allocation2 + $0x28] sm:$0x1] %v1491_v31  ;;  %3818 = vmatprep.subr.bf16.mxu1 %v4191_v28 }
  0x61   : > { %3819 = vmatpush3.bf16.msra.mxu1 %v4191_v28 }
  0x66   : > { %3713 = vmatmul.mubr.bf16.gmra.mrb[28].mxu0 %v4146_v32  ;;  %v1542_v32 = vsel %vm4484_vm5, 0, %v1541_v29 }
  0x67   : > { %3732 = vmatprep.mubr.bf16.mxu0 %v4148_v33  ;;  %v1545_v33 = vsel %vm4484_vm5, 0, %v1544_v27  ;;  %1543 = vst [vmem:[#allocation2 + $0x28] sm:$0x80] %v1542_v32 }
  0x68   : > { %1546 = vst [vmem:[#allocation2 + $0x30] sm:$0x80] %v1545_v33 }
  0x6e   : > { %3733 = vmatmul.mubr.bf16.vlgmr.msra.gmra.mrb[0].mxu0 %v4149_v34  ;;  %v1499_v34 = vld [vmem:[#allocation2 + $0x40] sm:$0x1] }
  0x6f   : > { %3765 = vmatpush3.bf16.msra.mxu0 %v4150_v25  ;;  %3736 = vmatprep.mubr.bf16.mxu0 %v4151_v35  ;;  %v1536_v25 = vsel %vm4484_vm5, 0, %v1535_v23  ;;  %v1550_v35 = vld [vmem:[#allocation2 + $0x40] sm:$0x80] }
  0x70   : > { %3766 = vmatprep.subr.bf16.mxu0 %v4153_v36  ;;  %1537 = vst [vmem:[#allocation2 + $0x18] sm:$0x80] %v1536_v25 }
  0x73   : > { %3767 = vmatpush3.bf16.msra.mxu0 %v4153_v36  ;;  %v1496_v36 = vld [vmem:[#allocation2 + $0x38] sm:$0x1] }
  0x74   : > { %3768 = vmatprep.subr.bf16.mxu0 %v4156_v37 }
  0x76   : > { %3737 = vmatmul.mubr.bf16.gmra.mrb[4].mxu0 %v4152_v38  ;;  %v1500_v38 = vsel %vm4480_vm4, 0, %v1499_v34 }
  0x77   : > { %3740 = vmatprep.mubr.bf16.mxu0 %v4154_v39  ;;  %3769 = vmatpush3.bf16.msra.mxu0 %v4156_v37  ;;  %v1547_v37 = vld [vmem:[#allocation2 + $0x38] sm:$0x80]  ;;  %v1551_v39 = vsel %vm4484_vm5, 0, %v1550_v35  ;;  %1501 = vst [vmem:[#allocation2 + $0x40] sm:$0x1] %v1500_v38 }
  0x78   : > { %3770 = vmatprep.subr.bf16.mxu0 %v4159_v40  ;;  %1552 = vst [vmem:[#allocation2 + $0x40] sm:$0x80] %v1551_v39 }
  0x7b   : > { %3771 = vmatpush3.bf16.msra.mxu0 %v4159_v40  ;;  %v1497_v40 = vsel %vm4480_vm4, 0, %v1496_v36 }
  0x7c   : > { %3772 = vmatprep.subr.bf16.mxu0 %v4162_v41  ;;  %1498 = vst [vmem:[#allocation2 + $0x38] sm:$0x1] %v1497_v40 }
  0x7e   : > { %3741 = vmatmul.mubr.bf16.gmra.mrb[8].mxu0 %v4155_v42  ;;  %v1505_v42 = vld [vmem:[#allocation2 + $0x50] sm:$0x1] }
  0x7f   : > { %3744 = vmatprep.mubr.bf16.mxu0 %v4157_v43  ;;  %3773 = vmatpush3.bf16.msra.mxu0 %v4162_v41  ;;  %v1548_v41 = vsel %vm4484_vm5, 0, %v1547_v37  ;;  %v1556_v43 = vld [vmem:[#allocation2 + $0x50] sm:$0x80] }
  0x80   : > { %3774 = vmatprep.subr.bf16.mxu0 %v4165_v44  ;;  %1549 = vst [vmem:[#allocation2 + $0x38] sm:$0x80] %v1548_v41 }
  0x83   : > { %3775 = vmatpush3.bf16.msra.mxu0 %v4165_v44  ;;  %v1502_v44 = vld [vmem:[#allocation2 + $0x48] sm:$0x1] }
  0x84   : > { %3776 = vmatprep.subr.bf16.mxu0 %v4168_v45 }
  0x86   : > { %3745 = vmatmul.mubr.bf16.gmra.mrb[12].mxu0 %v4158_v46  ;;  %v1506_v46 = vsel %vm4480_vm4, 0, %v1505_v42 }
  0x87   : > { %3748 = vmatprep.mubr.bf16.mxu0 %v4160_v47  ;;  %3777 = vmatpush3.bf16.msra.mxu0 %v4168_v45  ;;  %v1553_v45 = vld [vmem:[#allocation2 + $0x48] sm:$0x80]  ;;  %v1503_v47 = vsel %vm4480_vm4, 0, %v1502_v44  ;;  %1507 = vst [vmem:[#allocation2 + $0x50] sm:$0x1] %v1506_v46  ;;  %v4192_v44 = vld [vmem:[%s5132_s3 + $0x50] sm:$0xff]  }
  0x88   : > { %3778 = vmatprep.subr.bf16.mxu0 %v4171_v48  ;;  %1504 = vst [vmem:[#allocation2 + $0x48] sm:$0x1] %v1503_v47  ;;  %3820 = vmatprep.subr.bf16.mxu1 %v4192_v44 }
  0x89   : > { %3821 = vmatpush3.bf16.msra.mxu1 %v4192_v44 }
  0x8b   : > { %3779 = vmatpush3.bf16.msra.mxu0 %v4171_v48  ;;  %v1554_v48 = vsel %vm4484_vm5, 0, %v1553_v45 }
  0x8c   : > { %1555 = vst [vmem:[#allocation2 + $0x48] sm:$0x80] %v1554_v48 }
  0x8e   : > { %3749 = vmatmul.mubr.bf16.gmra.mrb[16].mxu0 %v4161_v49  ;;  %v1557_v49 = vsel %vm4484_vm5, 0, %v1556_v43 }
  0x8f   : > { %3752 = vmatprep.mubr.bf16.mxu0 %v4163_v50  ;;  %1558 = vst [vmem:[#allocation2 + $0x50] sm:$0x80] %v1557_v49  ;;  %v1511_v50 = vld [vmem:[#allocation2 + $0x60] sm:$0x1] }
  0x96   : > { %3753 = vmatmul.mubr.bf16.gmra.mrb[20].mxu0 %v4164_v51  ;;  %v1562_v51 = vld [vmem:[#allocation2 + $0x60] sm:$0x80] }
  0x97   : > { %3756 = vmatprep.mubr.bf16.mxu0 %v4166_v52  ;;  %v1508_v52 = vld [vmem:[#allocation2 + $0x58] sm:$0x1] }
  0x9e   : > { %3757 = vmatmul.mubr.bf16.gmra.mrb[24].mxu0 %v4167_v53  ;;  %v1559_v53 = vld [vmem:[#allocation2 + $0x58] sm:$0x80] }
  0x9f   : > { %3760 = vmatprep.mubr.bf16.mxu0 %v4169_v54  ;;  %v1512_v54 = vsel %vm4480_vm4, 0, %v1511_v50 }
  0xa0   : > { %1513 = vst [vmem:[#allocation2 + $0x60] sm:$0x1] %v1512_v54 }
  0xa6   : > { %3761 = vmatmul.mubr.bf16.gmra.mrb[28].mxu0 %v4170_v55  ;;  %v1563_v55 = vsel %vm4484_vm5, 0, %v1562_v51 }
  0xa7   : > { %3780 = vmatprep.mubr.bf16.mxu0 %v4172_v56  ;;  %v1509_v56 = vsel %vm4480_vm4, 0, %v1508_v52  ;;  %1564 = vst [vmem:[#allocation2 + $0x60] sm:$0x80] %v1563_v55 }
  0xa8   : > { %1510 = vst [vmem:[#allocation2 + $0x58] sm:$0x1] %v1509_v56  ;;  %v4202_v56 = vld [vmem:[%s5132_s3 + $0x70] sm:$0xff]  }
  0xae   : > { %3781 = vmatmul.mubr.bf16.vlgmr.msra.gmra.mrb[0].mxu0 %v4173_v57  ;;  %v1560_v57 = vsel %vm4484_vm5, 0, %v1559_v53 }
  0xaf   : > { %3784 = vmatprep.mubr.bf16.mxu0 %v4174_v58  ;;  %1561 = vst [vmem:[#allocation2 + $0x58] sm:$0x80] %v1560_v57  ;;  %v1517_v58 = vld [vmem:[#allocation2 + $0x70] sm:$0x1]  ;;  %v1708_v57 = vld [vmem:[#allocation2 + $0x8] sm:$0xff] }
  0xb6   : > { %3785 = vmatmul.mubr.bf16.gmra.mrb[4].mxu0 %v4175_v59  ;;  %v1568_v59 = vld [vmem:[#allocation2 + $0x70] sm:$0x80] }
  0xb7   : > { %3788 = vmatprep.mubr.bf16.mxu0 %v4176_v60  ;;  %v1514_v60 = vld [vmem:[#allocation2 + $0x68] sm:$0x1] }
  0xbe   : > { %3789 = vmatmul.mubr.bf16.gmra.mrb[8].mxu0 %v4177_v61  ;;  %v1565_v61 = vld [vmem:[#allocation2 + $0x68] sm:$0x80] }
  0xbf   : > { %3792 = vmatprep.mubr.bf16.mxu0 %v4178_v62  ;;  %v1518_v62 = vsel %vm4480_vm4, 0, %v1517_v58  ;;  %v4193_v58 = vld [vmem:[%s5132_s3 + $0x58] sm:$0xff]  }
  0xc0   : > { %1519 = vst [vmem:[#allocation2 + $0x70] sm:$0x1] %v1518_v62  ;;  %3822 = vmatprep.subr.bf16.mxu1 %v4193_v58 }
  0xc1   : > { %3823 = vmatpush3.bf16.msra.mxu1 %v4193_v58 }
  0xc6   : > { %3793 = vmatmul.mubr.bf16.gmra.mrb[12].mxu0 %v4179_v63  ;;  %v1515_v63 = vsel %vm4480_vm4, 0, %v1514_v60 }
  0xc7   : > { %3796 = vmatprep.mubr.bf16.mxu0 %v4180_v0  ;;  %v1566_v0 = vsel %vm4484_vm5, 0, %v1565_v61  ;;  %1516 = vst [vmem:[#allocation2 + $0x68] sm:$0x1] %v1515_v63 }
  0xc8   : > { %1567 = vst [vmem:[#allocation2 + $0x68] sm:$0x80] %v1566_v0 }
  0xce   : > { %3797 = vmatmul.mubr.bf16.gmra.mrb[16].mxu0 %v4181_v1  ;;  %v1569_v1 = vsel %vm4484_vm5, 0, %v1568_v59 }
  0xcf   : > { %3800 = vmatprep.mubr.bf16.mxu0 %v4182_v2  ;;  %1570 = vst [vmem:[#allocation2 + $0x70] sm:$0x80] %v1569_v1  ;;  %v1523_v2 = vld [vmem:[#allocation2 + $0x80] sm:$0x1] }
  0xd6   : > { %3801 = vmatmul.mubr.bf16.gmra.mrb[20].mxu0 %v4183_v3  ;;  %v1574_v3 = vld [vmem:[#allocation2 + $0x80] sm:$0x80] }
  0xd7   : > { %3804 = vmatprep.mubr.bf16.mxu0 %v4184_v4  ;;  %v1520_v4 = vld [vmem:[#allocation2 + $0x78] sm:$0x1] }
  0xd8   : > { %v1521_v9 = vsel %vm4480_vm4, 0, %v1520_v4 }
  0xd9   : > { %1522 = vst [vmem:[#allocation2 + $0x78] sm:$0x1] %v1521_v9 }
  0xde   : > { %3805 = vmatmul.mubr.bf16.gmra.mrb[24].mxu0 %v4185_v5  ;;  %v1571_v5 = vld [vmem:[#allocation2 + $0x78] sm:$0x80] }
  0xdf   : > { %3808 = vmatprep.mubr.bf16.mxu0 %v4186_v6  ;;  %v1524_v6 = vsel %vm4480_vm4, 0, %v1523_v2  ;;  %v1572_v10 = vsel %vm4484_vm5, 0, %v1571_v5 }
  0xe0   : > { %1525 = vst [vmem:[#allocation2 + $0x80] sm:$0x1] %v1524_v6  ;;  %1573 = vst [vmem:[#allocation2 + $0x78] sm:$0x80] %v1572_v10 }
  0xe6   : > { %3809 = vmatmul.mubr.bf16.gmra.mrb[28].mxu0 %v4187_v7  ;;  %v1575_v7 = vsel %vm4484_vm5, 0, %v1574_v3 }
  0xe7   : > { %1576 = vst [vmem:[#allocation2 + $0x80] sm:$0x80] %v1575_v7 }
 0x181   : > { %v3782_v12 = vpop.f32.mrb[0].mxu0 }
 0x182   : > { %v1328_v14 = vadd.f32 %v3782_v12, %v4561_v8  ;;  %v1160_v15 = vpop.f32.mrb[1].mxu0 }
 0x183   : > { %v1326_v16 = vadd.f32 %v4561_v8, %v1160_v15  ;;  %v3783_v17 = vpop.f32.mrb[2].mxu0 }
 0x184   : > { %v1392_v18 = vmul.f32 0.2, %v1328_v14  ;;  %v1329_v19 = vadd.f32 %v3783_v17, %v4561_v8  ;;  %v1163_v20 = vpop.f32.mrb[3].mxu0  ;;  %vm1360_vm6 = vcmp.ge.f32.partialorder %v1328_v14, 0.0 }
 0x185   : > { %v1390_v22 = vmul.f32 0.2, %v1326_v16  ;;  %v1327_v23 = vadd.f32 %v4561_v8, %v1163_v20  ;;  %vm1358_vm7 = vcmp.ge.f32.partialorder %v1326_v16, 0.0  ;;  %v1711_v20 = vld [vmem:[#allocation2 + $0x10] sm:$0xff] }
 0x186   : > { %vm1361_vm8 = vcmp.ge.f32.partialorder %v1329_v19, 0.0  ;;  %v1393_v24 = vmul.f32 0.2, %v1329_v19  ;;  %v1424_v26 = vsel %vm1360_vm6, %v1328_v14, %v1392_v18 }
 0x187   : > { %vm1359_vm9 = vcmp.ge.f32.partialorder %v1327_v23, 0.0  ;;  %v1391_v25 = vmul.f32 0.2, %v1327_v23  ;;  %v1422_v30 = vsel %vm1358_vm7, %v1326_v16, %v1390_v22 }
 0x188   : > { %v1425_v27 = vsel %vm1361_vm8, %v1329_v19, %v1393_v24  ;;  %v4619_v24 = vld [vmem:[%s5132_s3] sm:$0xff]  }
 0x189   : > { %v3786_v29 = vpop.f32.mrb[4].mxu0  ;;  %v1423_v31 = vsel %vm1359_vm9, %v1327_v23, %v1391_v25  ;;  %v4573_v32 = vpack.c.bf16 %v1425_v27, %v1424_v26  ;;  %3856 = vmatprep.subr.bf16.mxu1 %v4619_v24 }
 0x18a   : > { %v1332_v33 = vadd.f32 %v3786_v29, %v4561_v8  ;;  %v1176_v34 = vpop.f32.mrb[5].mxu0  ;;  %v1458_v35 = vpack.c.bf16 %v1423_v31, %v1422_v30  ;;  %v1714_v29 = vld [vmem:[#allocation2 + $0x18] sm:$0xff] }
 0x18b   : > { %v1330_v36 = vadd.f32 %v4561_v8, %v1176_v34  ;;  %v3787_v37 = vpop.f32.mrb[6].mxu0  ;;  %v1585_v38 = vshrl.u32 %v4573_v32, 16  ;;  %v1588_v43 = vshll.u32 %v4573_v32, 16 }
 0x18c   : > { %v1396_v39 = vmul.f32 0.2, %v1332_v33  ;;  %v1333_v40 = vadd.f32 %v3787_v37, %v4561_v8  ;;  %1772 = vrot.lane.b32.xlu0 %v1458_v35, %s4270_s6  ;;  %v1179_v41 = vpop.f32.mrb[7].mxu0  ;;  %v1578_v42 = vshrl.u32 %v1458_v35, 16  ;;  %vm1364_vm12 = vcmp.ge.f32.partialorder %v1332_v33, 0.0 }
 0x18d   : > { %v1394_v45 = vmul.f32 0.2, %v1330_v36  ;;  %v1331_v46 = vadd.f32 %v4561_v8, %v1179_v41  ;;  %v1581_v47 = vshll.u32 %v1458_v35, 16  ;;  %vm1362_vm13 = vcmp.ge.f32.partialorder %v1330_v36, 0.0 }
 0x18e   : > { %vm1365_vm14 = vcmp.ge.f32.partialorder %v1333_v40, 0.0  ;;  %v1397_v48 = vmul.f32 0.2, %v1333_v40  ;;  %v1580_v49 = vrot.slane %v1578_v42, 7  ;;  %v1428_v53 = vsel %vm1364_vm12, %v1332_v33, %v1396_v39 }
 0x18f   : > { %vm1363_vm15 = vcmp.ge.f32.partialorder %v1331_v46, 0.0  ;;  %v1395_v50 = vmul.f32 0.2, %v1331_v46  ;;  %v1837_v51 = vrot.slane %v1581_v47, 1  ;;  %v1587_v55 = vrot.slane %v1585_v38, 7 }
 0x190   : > { %1774 = vrot.lane.b32.xlu0 %v4573_v32, %s4270_s6  ;;  %v1583_v52 = vor.u32 %v1581_v47, %v1580_v49  ;;  %v1429_v54 = vsel %vm1365_vm14, %v1333_v40, %v1397_v48  ;;  %v1426_v62 = vsel %vm1362_vm13, %v1330_v36, %v1394_v45  ;;  %v1839_v3 = vrot.slane %v1588_v43, 1 }
 0x191   : > { %v3790_v59 = vpop.f32.mrb[8].mxu0  ;;  %v1838_v60 = vor.u32 %v1837_v51, %v1578_v42  ;;  %v4598_v61 = vpack.c.bf16 %v1429_v54, %v1428_v53  ;;  %v1427_v63 = vsel %vm1363_vm15, %v1331_v46, %v1395_v50  ;;  %v1590_v6 = vor.u32 %v1588_v43, %v1587_v55  ;;  %v1717_v55 = vld [vmem:[#allocation2 + $0x20] sm:$0xff] }
 0x192   : > { %v1336_v0 = vadd.f32 %v3790_v59, %v4561_v8  ;;  %v1192_v1 = vpop.f32.mrb[9].mxu0  ;;  %v1460_v2 = vpack.c.bf16 %v1427_v63, %v1426_v62  ;;  %v1709_v9 = vsel %vm4591_vm0, %v1583_v52, %v1708_v57  ;;  %v1840_v22 = vor.u32 %v1839_v3, %v1585_v38 }
 0x193   : > { %1869 = vrot.lane.b32.xlu1 %v1838_v60, %s4271_s11  ;;  %v1334_v4 = vadd.f32 %v4561_v8, %v1192_v1  ;;  %v3791_v5 = vpop.f32.mrb[10].mxu0  ;;  %v1599_v7 = vshrl.u32 %v4598_v61, 16  ;;  %v1602_v14 = vshll.u32 %v4598_v61, 16  ;;  %1710 = vst [vmem:[#allocation2 + $0x8] sm:$0xff] %v1709_v9  ;;  %v1712_v34 = vsel %vm4591_vm0, %v1590_v6, %v1711_v20  ;;  %v1720_v1 = vld [vmem:[#allocation2 + $0x28] sm:$0xff] }
 0x194   : > { %v1400_v10 = vmul.f32 0.2, %v1336_v0  ;;  %v1337_v11 = vadd.f32 %v3791_v5, %v4561_v8  ;;  %1778 = vrot.lane.b32.xlu0 %v4598_v61, %s4270_s6  ;;  %v1195_v13 = vpop.f32.mrb[11].mxu0  ;;  %v1592_v12 = vshrl.u32 %v1460_v2, 16  ;;  %vm1368_vm1 = vcmp.ge.f32.partialorder %v1336_v0, 0.0  ;;  %1713 = vst [vmem:[#allocation2 + $0x10] sm:$0xff] %v1712_v34 }
 0x195   : > { %v1398_v15 = vmul.f32 0.2, %v1334_v4  ;;  %v1335_v16 = vadd.f32 %v4561_v8, %v1195_v13  ;;  %v1595_v17 = vshll.u32 %v1460_v2, 16  ;;  %vm1366_vm2 = vcmp.ge.f32.partialorder %v1334_v4, 0.0 }
 0x196   : > { %vm1369_vm3 = vcmp.ge.f32.partialorder %v1337_v11, 0.0  ;;  %v1401_v18 = vmul.f32 0.2, %v1337_v11  ;;  %v1594_v19 = vrot.slane %v1592_v12, 7  ;;  %v1432_v26 = vsel %vm1368_vm1, %v1336_v0, %v1400_v10 }
 0x197   : > { %vm1367_vm4 = vcmp.ge.f32.partialorder %v1335_v16, 0.0  ;;  %v1399_v21 = vmul.f32 0.2, %v1335_v16  ;;  %1776 = vrot.lane.b32.xlu1 %v1460_v2, %s4270_s6  ;;  %v1841_v23 = vrot.slane %v1595_v17, 1  ;;  %v1601_v28 = vrot.slane %v1599_v7, 7 }
 0x198   : > { %v1597_v25 = vor.u32 %v1595_v17, %v1594_v19  ;;  %v1433_v27 = vsel %vm1369_vm3, %v1337_v11, %v1401_v18  ;;  %v1430_v31 = vsel %vm1366_vm2, %v1334_v4, %v1398_v15  ;;  %v1843_v39 = vrot.slane %v1602_v14, 1 }
 0x199   : > { %v3794_v30 = vpop.f32.mrb[12].mxu0  ;;  %v1431_v33 = vsel %vm1367_vm4, %v1335_v16, %v1399_v21  ;;  %v4625_v32 = vpack.c.bf16 %v1433_v27, %v1432_v26  ;;  %v1842_v38 = vor.u32 %v1841_v23, %v1592_v12  ;;  %v1604_v42 = vor.u32 %v1602_v14, %v1601_v28  ;;  %v1723_v28 = vld [vmem:[#allocation2 + $0x30] sm:$0xff] }
 0x19a   : > { %v1340_v35 = vadd.f32 %v3794_v30, %v4561_v8  ;;  %v1208_v36 = vpop.f32.mrb[13].mxu0  ;;  %v1462_v37 = vpack.c.bf16 %v1431_v33, %v1430_v31  ;;  %v1715_v44 = vsel %vm4591_vm0, %v1597_v25, %v1714_v29  ;;  %v1844_v58 = vor.u32 %v1843_v39, %v1599_v7 }
 0x19b   : > { %1871 = vrot.lane.b32.xlu1 %v1840_v22, %s4271_s11  ;;  %v1338_v40 = vadd.f32 %v4561_v8, %v1208_v36  ;;  %v3795_v41 = vpop.f32.mrb[14].mxu0  ;;  %v1613_v43 = vshrl.u32 %v4625_v32, 16  ;;  %v1616_v49 = vshll.u32 %v4625_v32, 16  ;;  %1716 = vst [vmem:[#allocation2 + $0x18] sm:$0xff] %v1715_v44  ;;  %v1718_v61 = vsel %vm4591_vm0, %v1604_v42, %v1717_v55 }
 0x19c   : > { %v1404_v45 = vmul.f32 0.2, %v1340_v35  ;;  %v1341_v46 = vadd.f32 %v3795_v41, %v4561_v8  ;;  %1780 = vrot.lane.b32.xlu0 %v1462_v37, %s4270_s6  ;;  %v1211_v47 = vpop.f32.mrb[15].mxu0  ;;  %v1606_v48 = vshrl.u32 %v1462_v37, 16  ;;  %vm1372_vm5 = vcmp.ge.f32.partialorder %v1340_v35, 0.0  ;;  %1719 = vst [vmem:[#allocation2 + $0x20] sm:$0xff] %v1718_v61 }
 0x19d   : > { %v1402_v50 = vmul.f32 0.2, %v1338_v40  ;;  %v1339_v51 = vadd.f32 %v4561_v8, %v1211_v47  ;;  %v1609_v52 = vshll.u32 %v1462_v37, 16  ;;  %vm1370_vm6 = vcmp.ge.f32.partialorder %v1338_v40, 0.0  ;;  %v1726_v37 = vld [vmem:[#allocation2 + $0x38] sm:$0xff] }
 0x19e   : > { %vm1373_vm7 = vcmp.ge.f32.partialorder %v1341_v46, 0.0  ;;  %v1405_v53 = vmul.f32 0.2, %v1341_v46  ;;  %v1608_v54 = vrot.slane %v1606_v48, 7  ;;  %v1436_v62 = vsel %vm1372_vm5, %v1340_v35, %v1404_v45 }
 0x19f   : > { %vm1371_vm8 = vcmp.ge.f32.partialorder %v1339_v51, 0.0  ;;  %v1403_v57 = vmul.f32 0.2, %v1339_v51  ;;  %1873 = vrot.lane.b32.xlu1 %v1842_v38, %s4271_s11  ;;  %v1845_v59 = vrot.slane %v1609_v52, 1  ;;  %v1615_v0 = vrot.slane %v1613_v43, 7 }
 0x1a0   : > { %1782 = vrot.lane.b32.xlu0 %v4625_v32, %s4270_s6  ;;  %v1611_v60 = vor.u32 %v1609_v52, %v1608_v54  ;;  %v1437_v63 = vsel %vm1373_vm7, %v1341_v46, %v1405_v53  ;;  %v1434_v3 = vsel %vm1370_vm6, %v1338_v40, %v1402_v50  ;;  %v1847_v11 = vrot.slane %v1616_v49, 1 }
 0x1a1   : > { %v3798_v2 = vpop.f32.mrb[16].mxu0  ;;  %v1435_v4 = vsel %vm1371_vm8, %v1339_v51, %v1403_v57  ;;  %v4649_v5 = vpack.c.bf16 %v1437_v63, %v1436_v62  ;;  %v1846_v10 = vor.u32 %v1845_v59, %v1606_v48  ;;  %v1618_v14 = vor.u32 %v1616_v49, %v1615_v0  ;;  %v1729_v0 = vld [vmem:[#allocation2 + $0x40] sm:$0xff] }
 0x1a2   : > { %v1344_v6 = vadd.f32 %v3798_v2, %v4561_v8  ;;  %v1224_v7 = vpop.f32.mrb[17].mxu0  ;;  %v1464_v9 = vpack.c.bf16 %v1435_v4, %v1434_v3  ;;  %v1721_v16 = vsel %vm4591_vm0, %v1611_v60, %v1720_v1  ;;  %v1848_v30 = vor.u32 %v1847_v11, %v1613_v43 }
 0x1a3   : > { %1875 = vrot.lane.b32.xlu1 %v1844_v58, %s4271_s11  ;;  %v1342_v13 = vadd.f32 %v4561_v8, %v1224_v7  ;;  %v3799_v12 = vpop.f32.mrb[18].mxu0  ;;  %v1627_v15 = vshrl.u32 %v4649_v5, 16  ;;  %v1630_v21 = vshll.u32 %v4649_v5, 16  ;;  %1722 = vst [vmem:[#allocation2 + $0x28] sm:$0xff] %v1721_v16  ;;  %v1724_v32 = vsel %vm4591_vm0, %v1618_v14, %v1723_v28 }
 0x1a4   : > { %v1408_v17 = vmul.f32 0.2, %v1344_v6  ;;  %v1345_v18 = vadd.f32 %v3799_v12, %v4561_v8  ;;  %1784 = vrot.lane.b32.xlu0 %v1464_v9, %s4270_s6  ;;  %v1227_v19 = vpop.f32.mrb[19].mxu0  ;;  %v1620_v20 = vshrl.u32 %v1464_v9, 16  ;;  %vm1376_vm9 = vcmp.ge.f32.partialorder %v1344_v6, 0.0  ;;  %1725 = vst [vmem:[#allocation2 + $0x30] sm:$0xff] %v1724_v32 }
 0x1a5   : > { %v1406_v22 = vmul.f32 0.2, %v1342_v13  ;;  %v1343_v23 = vadd.f32 %v4561_v8, %v1227_v19  ;;  %v1623_v25 = vshll.u32 %v1464_v9, 16  ;;  %vm1374_vm10 = vcmp.ge.f32.partialorder %v1342_v13, 0.0  ;;  %v1732_v9 = vld [vmem:[#allocation2 + $0x48] sm:$0xff] }
 0x1a6   : > { %vm1377_vm11 = vcmp.ge.f32.partialorder %v1345_v18, 0.0  ;;  %v1409_v26 = vmul.f32 0.2, %v1345_v18  ;;  %v1622_v27 = vrot.slane %v1620_v20, 7  ;;  %v1440_v34 = vsel %vm1376_vm9, %v1344_v6, %v1408_v17 }
 0x1a7   : > { %vm1375_vm12 = vcmp.ge.f32.partialorder %v1343_v23, 0.0  ;;  %v1407_v29 = vmul.f32 0.2, %v1343_v23  ;;  %1877 = vrot.lane.b32.xlu1 %v1846_v10, %s4271_s11  ;;  %v1849_v31 = vrot.slane %v1623_v25, 1  ;;  %v1629_v36 = vrot.slane %v1627_v15, 7 }
 0x1a8   : > { %1786 = vrot.lane.b32.xlu0 %v4649_v5, %s4270_s6  ;;  %v1625_v33 = vor.u32 %v1623_v25, %v1622_v27  ;;  %v1441_v35 = vsel %vm1377_vm11, %v1345_v18, %v1409_v26  ;;  %v1438_v39 = vsel %vm1374_vm10, %v1342_v13, %v1406_v22  ;;  %v1851_v46 = vrot.slane %v1630_v21, 1 }
 0x1a9   : > { %v3802_v38 = vpop.f32.mrb[20].mxu0  ;;  %v1439_v40 = vsel %vm1375_vm12, %v1343_v23, %v1407_v29  ;;  %v4672_v41 = vpack.c.bf16 %v1441_v35, %v1440_v34  ;;  %v1850_v45 = vor.u32 %v1849_v31, %v1620_v20  ;;  %v1632_v49 = vor.u32 %v1630_v21, %v1629_v36  ;;  %v1735_v36 = vld [vmem:[#allocation2 + $0x50] sm:$0xff] }
 0x1aa   : > { %v1348_v42 = vadd.f32 %v3802_v38, %v4561_v8  ;;  %v1240_v43 = vpop.f32.mrb[21].mxu0  ;;  %v1466_v44 = vpack.c.bf16 %v1439_v40, %v1438_v39  ;;  %v1727_v51 = vsel %vm4591_vm0, %v1625_v33, %v1726_v37  ;;  %v1852_v2 = vor.u32 %v1851_v46, %v1627_v15 }
 0x1ab   : > { %1879 = vrot.lane.b32.xlu1 %v1848_v30, %s4271_s11  ;;  %v1346_v47 = vadd.f32 %v4561_v8, %v1240_v43  ;;  %v3803_v48 = vpop.f32.mrb[22].mxu0  ;;  %v1641_v50 = vshrl.u32 %v4672_v41, 16  ;;  %v1644_v57 = vshll.u32 %v4672_v41, 16  ;;  %1728 = vst [vmem:[#allocation2 + $0x38] sm:$0xff] %v1727_v51  ;;  %v1730_v5 = vsel %vm4591_vm0, %v1632_v49, %v1729_v0 }
 0x1ac   : > { %v1412_v52 = vmul.f32 0.2, %v1348_v42  ;;  %v1349_v53 = vadd.f32 %v3803_v48, %v4561_v8  ;;  %1788 = vrot.lane.b32.xlu0 %v1466_v44, %s4270_s6  ;;  %v1243_v54 = vpop.f32.mrb[23].mxu0  ;;  %v1634_v55 = vshrl.u32 %v1466_v44, 16  ;;  %vm1380_vm13 = vcmp.ge.f32.partialorder %v1348_v42, 0.0  ;;  %1731 = vst [vmem:[#allocation2 + $0x40] sm:$0xff] %v1730_v5 }
 0x1ad   : > { %v1410_v58 = vmul.f32 0.2, %v1346_v47  ;;  %v1347_v59 = vadd.f32 %v4561_v8, %v1243_v54  ;;  %v1637_v60 = vshll.u32 %v1466_v44, 16  ;;  %vm1378_vm14 = vcmp.ge.f32.partialorder %v1346_v47, 0.0  ;;  %v1738_v44 = vld [vmem:[#allocation2 + $0x58] sm:$0xff] }
 0x1ae   : > { %vm1381_vm15 = vcmp.ge.f32.partialorder %v1349_v53, 0.0  ;;  %v1413_v62 = vmul.f32 0.2, %v1349_v53  ;;  %v1636_v63 = vrot.slane %v1634_v55, 7  ;;  %v1444_v61 = vsel %vm1380_vm13, %v1348_v42, %v1412_v52 }
 0x1af   : > { %vm1379_vm1 = vcmp.ge.f32.partialorder %v1347_v59, 0.0  ;;  %v1411_v1 = vmul.f32 0.2, %v1347_v59  ;;  %1881 = vrot.lane.b32.xlu1 %v1850_v45, %s4271_s11  ;;  %v1853_v3 = vrot.slane %v1637_v60, 1  ;;  %v1643_v7 = vrot.slane %v1641_v50, 7 }
 0x1b0   : > { %1790 = vrot.lane.b32.xlu0 %v4672_v41, %s4270_s6  ;;  %v1639_v4 = vor.u32 %v1637_v60, %v1636_v63  ;;  %v1445_v6 = vsel %vm1381_vm15, %v1349_v53, %v1413_v62  ;;  %v1442_v11 = vsel %vm1378_vm14, %v1346_v47, %v1410_v58  ;;  %v1855_v18 = vrot.slane %v1644_v57, 1 }
 0x1b1   : > { %v3806_v10 = vpop.f32.mrb[24].mxu0  ;;  %v1443_v13 = vsel %vm1379_vm1, %v1347_v59, %v1411_v1  ;;  %v4695_v12 = vpack.c.bf16 %v1445_v6, %v1444_v61  ;;  %v1854_v17 = vor.u32 %v1853_v3, %v1634_v55  ;;  %v1646_v21 = vor.u32 %v1644_v57, %v1643_v7  ;;  %v1741_v7 = vld [vmem:[#allocation2 + $0x60] sm:$0xff] }
 0x1b2   : > { %v1352_v14 = vadd.f32 %v3806_v10, %v4561_v8  ;;  %v1256_v15 = vpop.f32.mrb[25].mxu0  ;;  %v1468_v16 = vpack.c.bf16 %v1443_v13, %v1442_v11  ;;  %v1733_v23 = vsel %vm4591_vm0, %v1639_v4, %v1732_v9  ;;  %v1856_v38 = vor.u32 %v1855_v18, %v1641_v50  ;;  %v1744_v13 = vld [vmem:[#allocation2 + $0x68] sm:$0xff] }
 0x1b3   : > { %1883 = vrot.lane.b32.xlu1 %v1852_v2, %s4271_s11  ;;  %v1350_v19 = vadd.f32 %v4561_v8, %v1256_v15  ;;  %v3807_v20 = vpop.f32.mrb[26].mxu0  ;;  %v1655_v22 = vshrl.u32 %v4695_v12, 16  ;;  %v1658_v29 = vshll.u32 %v4695_v12, 16  ;;  %1734 = vst [vmem:[#allocation2 + $0x48] sm:$0xff] %v1733_v23  ;;  %v1736_v41 = vsel %vm4591_vm0, %v1646_v21, %v1735_v36 }
 0x1b4   : > { %v1416_v25 = vmul.f32 0.2, %v1352_v14  ;;  %v1353_v26 = vadd.f32 %v3807_v20, %v4561_v8  ;;  %1792 = vrot.lane.b32.xlu0 %v1468_v16, %s4270_s6  ;;  %v1259_v27 = vpop.f32.mrb[27].mxu0  ;;  %v1648_v28 = vshrl.u32 %v1468_v16, 16  ;;  %vm1384_vm2 = vcmp.ge.f32.partialorder %v1352_v14, 0.0  ;;  %1737 = vst [vmem:[#allocation2 + $0x50] sm:$0xff] %v1736_v41 }
 0x1b5   : > { %v1414_v30 = vmul.f32 0.2, %v1350_v19  ;;  %v1351_v31 = vadd.f32 %v4561_v8, %v1259_v27  ;;  %v1651_v33 = vshll.u32 %v1468_v16, 16  ;;  %vm1382_vm3 = vcmp.ge.f32.partialorder %v1350_v19, 0.0 }
 0x1b6   : > { %vm1385_vm4 = vcmp.ge.f32.partialorder %v1353_v26, 0.0  ;;  %v1417_v34 = vmul.f32 0.2, %v1353_v26  ;;  %v1650_v35 = vrot.slane %v1648_v28, 7  ;;  %v1448_v32 = vsel %vm1384_vm2, %v1352_v14, %v1416_v25 }
 0x1b7   : > { %vm1383_vm5 = vcmp.ge.f32.partialorder %v1351_v31, 0.0  ;;  %v1415_v37 = vmul.f32 0.2, %v1351_v31  ;;  %1885 = vrot.lane.b32.xlu1 %v1854_v17, %s4271_s11  ;;  %v1857_v39 = vrot.slane %v1651_v33, 1  ;;  %v1657_v43 = vrot.slane %v1655_v22, 7 }
 0x1b8   : > { %1794 = vrot.lane.b32.xlu0 %v4695_v12, %s4270_s6  ;;  %v1653_v40 = vor.u32 %v1651_v33, %v1650_v35  ;;  %v1449_v42 = vsel %vm1385_vm4, %v1353_v26, %v1417_v34  ;;  %v1446_v46 = vsel %vm1382_vm3, %v1350_v19, %v1414_v30  ;;  %v1859_v53 = vrot.slane %v1658_v29, 1  ;;  %v1747_v19 = vld [vmem:[#allocation2 + $0x70] sm:$0xff]  ;;  %v1753_v35 = vld [vmem:[#allocation2 + $0x80] sm:$0xff] }
 0x1b9   : > { %v3810_v45 = vpop.f32.mrb[28].mxu0  ;;  %v1447_v47 = vsel %vm1383_vm5, %v1351_v31, %v1415_v37  ;;  %v4716_v48 = vpack.c.bf16 %v1449_v42, %v1448_v32  ;;  %v1858_v52 = vor.u32 %v1857_v39, %v1648_v28  ;;  %v1660_v57 = vor.u32 %v1658_v29, %v1657_v43  ;;  %v1750_v37 = vld [vmem:[#allocation2 + $0x78] sm:$0xff] }
 0x1ba   : > { %v1356_v49 = vadd.f32 %v3810_v45, %v4561_v8  ;;  %v1272_v50 = vpop.f32.mrb[29].mxu0  ;;  %v1470_v51 = vpack.c.bf16 %v1447_v47, %v1446_v46  ;;  %v1739_v59 = vsel %vm4591_vm0, %v1653_v40, %v1738_v44  ;;  %v1860_v61 = vor.u32 %v1859_v53, %v1655_v22 }
 0x1bb   : > { %1887 = vrot.lane.b32.xlu1 %v1856_v38, %s4271_s11  ;;  %v1354_v54 = vadd.f32 %v4561_v8, %v1272_v50  ;;  %v3811_v55 = vpop.f32.mrb[30].mxu0  ;;  %v1669_v58 = vshrl.u32 %v4716_v48, 16  ;;  %1740 = vst [vmem:[#allocation2 + $0x58] sm:$0xff] %v1739_v59  ;;  %v1672_v11 = vshll.u32 %v4716_v48, 16  ;;  %v1742_v18 = vsel %vm4591_vm0, %v1660_v57, %v1741_v7 }
 0x1bc   : > { %vm1388_vm6 = vcmp.ge.f32.partialorder %v1356_v49, 0.0  ;;  %v1420_v60 = vmul.f32 0.2, %v1356_v49  ;;  %v1357_v62 = vadd.f32 %v3811_v55, %v4561_v8  ;;  %1796 = vrot.lane.b32.xlu0 %v1470_v51, %s4270_s6  ;;  %v1275_v63 = vpop.f32.mrb[31].mxu0  ;;  %v1662_v0 = vshrl.u32 %v1470_v51, 16  ;;  %1743 = vst [vmem:[#allocation2 + $0x60] sm:$0xff] %v1742_v18 }
 0x1bd   : > { %vm1386_vm7 = vcmp.ge.f32.partialorder %v1354_v54, 0.0  ;;  %v1418_v1 = vmul.f32 0.2, %v1354_v54  ;;  %v1355_v2 = vadd.f32 %v4561_v8, %v1275_v63  ;;  %v1665_v3 = vshll.u32 %v1470_v51, 16 }
 0x1be   : > { %vm1389_vm8 = vcmp.ge.f32.partialorder %v1357_v62, 0.0  ;;  %v1421_v4 = vmul.f32 0.2, %v1357_v62  ;;  %v1664_v6 = vrot.slane %v1662_v0, 7  ;;  %v1452_v10 = vsel %vm1388_vm6, %v1356_v49, %v1420_v60  ;;  %v4196_v60 = vld [vmem:[%s5132_s3 + $0x10] sm:$0xff]  }
 0x1bf   : > { %vm1387_vm9 = vcmp.ge.f32.partialorder %v1355_v2, 0.0  ;;  %v1419_v9 = vmul.f32 0.2, %v1355_v2  ;;  %1889 = vrot.lane.b32.xlu1 %v1858_v52, %s4271_s11  ;;  %v1450_v8 = vsel %vm1386_vm7, %v1354_v54, %v1418_v1  ;;  %v1671_v14 = vrot.slane %v1669_v58, 7  ;;  %v4195_v54 = vld [vmem:[%s5132_s3 + $0x8] sm:$0xff]   ;;  %v4197_v1 = vld [vmem:[%s5132_s3 + $0x18] sm:$0xff]  }
 0x1c0   : > { %1798 = vrot.lane.b32.xlu0 %v4716_v48, %s4270_s6  ;;  %v1667_v12 = vor.u32 %v1665_v3, %v1664_v6  ;;  %v1453_v5 = vsel %vm1389_vm8, %v1357_v62, %v1421_v4  ;;  %v1861_v16 = vrot.slane %v1665_v3, 1  ;;  %v1863_v29 = vrot.slane %v1672_v11, 1  ;;  %v4198_v6 = vld [vmem:[%s5132_s3 + $0x20] sm:$0xff]  }
 0x1c1   : > { %v1451_v15 = vsel %vm1387_vm9, %v1355_v2, %v1419_v9  ;;  %v1473_v17 = vpack.c.bf16 %v1453_v5, %v1452_v10  ;;  %v1674_v21 = vor.u32 %v1672_v11, %v1671_v14  ;;  %vm1454_vm10 = vcmask 785408  }
 0x1c2   : > { %v1472_v20 = vpack.c.bf16 %v1451_v15, %v1450_v8  ;;  %v1745_v22 = vsel %vm4591_vm0, %v1667_v12, %v1744_v13  ;;  %v1862_v28 = vor.u32 %v1861_v16, %v1662_v0  ;;  %v4272_v39 = vmov 0   ;;  %v4199_v13 = vld [vmem:[%s5132_s3 + $0x28] sm:$0xff]   ;;  %v4828_v15 = vld [vmem:[%s5132_s3 + $0x60] sm:$0xff]  }
 0x1c3   : > { %1891 = vrot.lane.b32.xlu1 %v1860_v61, %s4271_s11  ;;  %v1683_v23 = vshrl.u32 %v1473_v17, 16  ;;  %1746 = vst [vmem:[#allocation2 + $0x68] sm:$0xff] %v1745_v22  ;;  %v1748_v27 = vsel %vm4591_vm0, %v1674_v21, %v1747_v19  ;;  %v1686_v30 = vshll.u32 %v1473_v17, 16  ;;  %1455 = vst.msk [vmem:[#allocation2] sm:$0xff] %vm1454_vm10, %v4272_v39  ;;  %v1864_v40 = vor.u32 %v1863_v29, %v1669_v58 }
 0x1c4   : > { %1800 = vrot.lane.b32.xlu0 %v1472_v20, %s4270_s6  ;;  %v1676_v25 = vshrl.u32 %v1472_v20, 16  ;;  %v1679_v26 = vshll.u32 %v1472_v20, 16  ;;  %1749 = vst [vmem:[#allocation2 + $0x70] sm:$0xff] %v1748_v27  ;;  %1457 = vst.msk [vmem:[#allocation2 + $0x88] sm:$0xff] %vm1454_vm10, %v4272_v39  ;;  %vm1820_vm11 = vcmask 523520   ;;  %vm1917_vm12 = vcmask 785920  }
 0x1c5   : > { %v1685_v31 = vrot.slane %v1683_v23, 7  ;;  %v1867_v32 = vrot.slane %v1686_v30, 1  ;;  %vm1918_vm13 = vsmask.f32 7424  ;;  %vm3085_vm1 = vcmask 257024  }
 0x1c6   : > { %v1865_v33 = vrot.slane %v1679_v26, 1  ;;  %v1678_v34 = vrot.slane %v1676_v25, 7  ;;  %vm4756_vm14 = vmand %vm1917_vm12, %vm1918_vm13 }
 0x1c7   : > { %1893 = vrot.lane.b32.xlu1 %v1862_v28, %s4271_s11  ;;  %v1688_v36 = vor.u32 %v1686_v30, %v1685_v31  ;;  %v1868_v45 = vor.u32 %v1867_v32, %v1683_v23 }
 0x1c8   : > { %1802 = vrot.lane.b32.xlu0 %v1473_v17, %s4270_s6  ;;  %v1681_v38 = vor.u32 %v1679_v26, %v1678_v34  ;;  %v1866_v43 = vor.u32 %v1865_v33, %v1676_v25 }
 0x1c9   : > { %v1754_v42 = vsel %vm4591_vm0, %v1688_v36, %v1753_v35 }
 0x1ca   : > { %v1751_v44 = vsel %vm4591_vm0, %v1681_v38, %v1750_v37  ;;  %1755 = vst [vmem:[#allocation2 + $0x80] sm:$0xff] %v1754_v42 }
 0x1cb   : > { %1895 = vrot.lane.b32.xlu1 %v1864_v40, %s4271_s11  ;;  %1752 = vst [vmem:[#allocation2 + $0x78] sm:$0xff] %v1751_v44 }
 0x1cc   : > { %1897 = vrot.lane.b32.xlu0 %v1866_v43, %s4271_s11 }
 0x1cf   : > { %1899 = vrot.lane.b32.xlu1 %v1868_v45, %s4271_s11 }
 0x1fe   : > { %v1773_v46 = vpop.permute.xlu0 %1772 }
 0x1ff   : > { %1821 = vst.msk [vmem:[#allocation2 + $0x8] sm:$0xff] %vm1820_vm11, %v1773_v46 }
 0x202   : > { %v1775_v47 = vpop.permute.xlu0 %1774 }
 0x203   : > { %1822 = vst.msk [vmem:[#allocation2 + $0x10] sm:$0xff] %vm1820_vm11, %v1775_v47 }
 0x205   : > { %v1870_v48 = vpop.permute.xlu1 %1869 }
 0x206   : > { %v1920_v41 = vld [vmem:[#allocation2 + $0x8] sm:$0xff]  ;;  %v1779_v49 = vpop.permute.xlu0 %1778 }
 0x207   : > { %v4762_v50 = vsel %vm4756_vm14, %v1870_v48, %v1920_v41  ;;  %1824 = vst.msk [vmem:[#allocation2 + $0x20] sm:$0xff] %vm1820_vm11, %v1779_v49 }
 0x208   : > { %1922 = vst [vmem:[#allocation2 + $0x8] sm:$0xff] %v4762_v50  ;;  %3824 = vmatprep.mubr.msk.bf16.mxu1 %vm1454_vm10, %v4762_v50 }
 0x209   : > { %v1777_v51 = vpop.permute.xlu1 %1776 }
 0x20a   : > { %1823 = vst.msk [vmem:[#allocation2 + $0x18] sm:$0xff] %vm1820_vm11, %v1777_v51  ;;  %v1923_v52 = vld [vmem:[#allocation2 + $0x10] sm:$0xff] }
 0x20d   : > { %v1872_v53 = vpop.permute.xlu1 %1871 }
 0x20e   : > { %v4774_v55 = vsel %vm4756_vm14, %v1872_v53, %v1923_v52  ;;  %v1781_v57 = vpop.permute.xlu0 %1780  ;;  %v1968_v53 = vld [vmem:[#allocation2] sm:$0xff] }
 0x20f   : > { %1925 = vst [vmem:[#allocation2 + $0x10] sm:$0xff] %v4774_v55  ;;  %1825 = vst.msk [vmem:[#allocation2 + $0x28] sm:$0xff] %vm1820_vm11, %v1781_v57  ;;  %3825 = vmatmul.mubr.msk.bf16.vlgmr.msra.gmra.mrb[0].mxu1 %vm1454_vm10, %v4774_v55  ;;  %v4203_v57 = vld [vmem:[%s5132_s3 + $0x78] sm:$0xff]  }
 0x210   : > { %3857 = vmatpush3.bf16.msra.mxu1 %v4619_v24  ;;  %v1929_v24 = vld [vmem:[#allocation2 + $0x20] sm:$0xff] }
 0x211   : > { %v1874_v58 = vpop.permute.xlu1 %1873  ;;  %v1926_v59 = vld [vmem:[#allocation2 + $0x18] sm:$0xff]  ;;  %3858 = vmatprep.subr.bf16.mxu1 %v4195_v54 }
 0x212   : > { %v4786_v62 = vsel %vm4756_vm14, %v1874_v58, %v1926_v59  ;;  %v1783_v63 = vpop.permute.xlu0 %1782  ;;  %v4205_v58 = vld [vmem:[%s5132_s3 + $0x88] sm:$0xff]   ;;  %v4972_v59 = vld [vmem:[%s5133_s4] ss:$0 sm:$0xff] }
 0x213   : > { %1928 = vst [vmem:[#allocation2 + $0x18] sm:$0xff] %v4786_v62  ;;  %1826 = vst.msk [vmem:[#allocation2 + $0x30] sm:$0xff] %vm1820_vm11, %v1783_v63  ;;  %3828 = vmatprep.mubr.msk.bf16.mxu1 %vm1454_vm10, %v4786_v62 }
 0x214   : > { %3859 = vmatpush3.bf16.msra.mxu1 %v4195_v54  ;;  %v4201_v54 = vld [vmem:[%s5132_s3 + $0x68] sm:$0xff]  }
 0x215   : > { %v1876_v0 = vpop.permute.xlu1 %1875  ;;  %3860 = vmatprep.subr.bf16.mxu1 %v4196_v60 }
 0x216   : > { %v4797_v2 = vsel %vm4756_vm14, %v1876_v0, %v1929_v24  ;;  %v1785_v3 = vpop.permute.xlu0 %1784  ;;  %v1932_v61 = vld [vmem:[#allocation2 + $0x28] sm:$0xff] }
 0x217   : > { %1931 = vst [vmem:[#allocation2 + $0x20] sm:$0xff] %v4797_v2  ;;  %1827 = vst.msk [vmem:[#allocation2 + $0x38] sm:$0xff] %vm1820_vm11, %v1785_v3  ;;  %3829 = vmatmul.mubr.msk.bf16.gmra.mrb[4].mxu1 %vm1454_vm10, %v4797_v2 }
 0x218   : > { %3861 = vmatpush3.bf16.msra.mxu1 %v4196_v60 }
 0x219   : > { %v1878_v4 = vpop.permute.xlu1 %1877  ;;  %3862 = vmatprep.subr.bf16.mxu1 %v4197_v1 }
 0x21a   : > { %v4808_v7 = vsel %vm4756_vm14, %v1878_v4, %v1932_v61  ;;  %v1787_v9 = vpop.permute.xlu0 %1786  ;;  %v1935_v10 = vld [vmem:[#allocation2 + $0x30] sm:$0xff] }
 0x21b   : > { %1934 = vst [vmem:[#allocation2 + $0x28] sm:$0xff] %v4808_v7  ;;  %1828 = vst.msk [vmem:[#allocation2 + $0x40] sm:$0xff] %vm1820_vm11, %v1787_v9  ;;  %3832 = vmatprep.mubr.msk.bf16.mxu1 %vm1454_vm10, %v4808_v7 }
 0x21c   : > { %3863 = vmatpush3.bf16.msra.mxu1 %v4197_v1 }
 0x21d   : > { %v1880_v11 = vpop.permute.xlu1 %1879  ;;  %3864 = vmatprep.subr.bf16.mxu1 %v4198_v6 }
 0x21e   : > { %v4819_v8 = vsel %vm4756_vm14, %v1880_v11, %v1935_v10  ;;  %v1789_v12 = vpop.permute.xlu0 %1788  ;;  %v1938_v14 = vld [vmem:[#allocation2 + $0x38] sm:$0xff] }
 0x21f   : > { %1937 = vst [vmem:[#allocation2 + $0x30] sm:$0xff] %v4819_v8  ;;  %1829 = vst.msk [vmem:[#allocation2 + $0x48] sm:$0xff] %vm1820_vm11, %v1789_v12  ;;  %3833 = vmatmul.mubr.msk.bf16.gmra.mrb[8].mxu1 %vm1454_vm10, %v4819_v8 }
 0x220   : > { %3865 = vmatpush3.bf16.msra.mxu1 %v4198_v6 }
 0x221   : > { %v1882_v5 = vpop.permute.xlu1 %1881  ;;  %3866 = vmatprep.subr.bf16.mxu1 %v4199_v13 }
 0x222   : > { %v4832_v16 = vsel %vm4756_vm14, %v1882_v5, %v1938_v14  ;;  %v1791_v17 = vpop.permute.xlu0 %1790  ;;  %v1941_v18 = vld [vmem:[#allocation2 + $0x40] sm:$0xff] }
 0x223   : > { %1940 = vst [vmem:[#allocation2 + $0x38] sm:$0xff] %v4832_v16  ;;  %1830 = vst.msk [vmem:[#allocation2 + $0x50] sm:$0xff] %vm1820_vm11, %v1791_v17  ;;  %3836 = vmatprep.mubr.msk.bf16.mxu1 %vm1454_vm10, %v4832_v16 }
 0x224   : > { %3867 = vmatpush3.bf16.msra.mxu1 %v4199_v13 }
 0x225   : > { %v1884_v19 = vpop.permute.xlu1 %1883  ;;  %3900 = vmatprep.subr.bf16.mxu1 %v4828_v15 }
 0x226   : > { %v4841_v20 = vsel %vm4756_vm14, %v1884_v19, %v1941_v18  ;;  %v1793_v21 = vpop.permute.xlu0 %1792  ;;  %v1944_v23 = vld [vmem:[#allocation2 + $0x48] sm:$0xff] }
 0x227   : > { %1943 = vst [vmem:[#allocation2 + $0x40] sm:$0xff] %v4841_v20  ;;  %1831 = vst.msk [vmem:[#allocation2 + $0x58] sm:$0xff] %vm1820_vm11, %v1793_v21  ;;  %3837 = vmatmul.mubr.msk.bf16.gmra.mrb[12].mxu1 %vm1454_vm10, %v4841_v20 }
 0x229   : > { %v1886_v22 = vpop.permute.xlu1 %1885 }
 0x22a   : > { %v4849_v25 = vsel %vm4756_vm14, %v1886_v22, %v1944_v23  ;;  %v1795_v26 = vpop.permute.xlu0 %1794  ;;  %v1947_v27 = vld [vmem:[#allocation2 + $0x50] sm:$0xff] }
 0x22b   : > { %1946 = vst [vmem:[#allocation2 + $0x48] sm:$0xff] %v4849_v25  ;;  %1832 = vst.msk [vmem:[#allocation2 + $0x60] sm:$0xff] %vm1820_vm11, %v1795_v26  ;;  %3840 = vmatprep.mubr.msk.bf16.mxu1 %vm1454_vm10, %v4849_v25 }
 0x22d   : > { %v1888_v28 = vpop.permute.xlu1 %1887 }
 0x22e   : > { %v4857_v29 = vsel %vm4756_vm14, %v1888_v28, %v1947_v27  ;;  %v1797_v30 = vpop.permute.xlu0 %1796  ;;  %v1950_v33 = vld [vmem:[#allocation2 + $0x58] sm:$0xff] }
 0x22f   : > { %1949 = vst [vmem:[#allocation2 + $0x50] sm:$0xff] %v4857_v29  ;;  %1833 = vst.msk [vmem:[#allocation2 + $0x68] sm:$0xff] %vm1820_vm11, %v1797_v30  ;;  %3841 = vmatmul.mubr.msk.bf16.gmra.mrb[16].mxu1 %vm1454_vm10, %v4857_v29 }
 0x231   : > { %v1890_v31 = vpop.permute.xlu1 %1889 }
 0x232   : > { %v4865_v34 = vsel %vm4756_vm14, %v1890_v31, %v1950_v33  ;;  %v1799_v35 = vpop.permute.xlu0 %1798  ;;  %v1953_v36 = vld [vmem:[#allocation2 + $0x60] sm:$0xff] }
 0x233   : > { %1952 = vst [vmem:[#allocation2 + $0x58] sm:$0xff] %v4865_v34  ;;  %1834 = vst.msk [vmem:[#allocation2 + $0x70] sm:$0xff] %vm1820_vm11, %v1799_v35  ;;  %3844 = vmatprep.mubr.msk.bf16.mxu1 %vm1454_vm10, %v4865_v34 }
 0x235   : > { %v1892_v37 = vpop.permute.xlu1 %1891 }
 0x236   : > { %v4873_v38 = vsel %vm4756_vm14, %v1892_v37, %v1953_v36  ;;  %v1801_v39 = vpop.permute.xlu0 %1800  ;;  %v1956_v32 = vld [vmem:[#allocation2 + $0x68] sm:$0xff] }
 0x237   : > { %1955 = vst [vmem:[#allocation2 + $0x60] sm:$0xff] %v4873_v38  ;;  %1835 = vst.msk [vmem:[#allocation2 + $0x78] sm:$0xff] %vm1820_vm11, %v1801_v39  ;;  %3845 = vmatmul.mubr.msk.bf16.gmra.mrb[20].mxu1 %vm1454_vm10, %v4873_v38 }
 0x239   : > { %v1894_v40 = vpop.permute.xlu1 %1893 }
 0x23a   : > { %v4881_v42 = vsel %vm4756_vm14, %v1894_v40, %v1956_v32  ;;  %v1803_v43 = vpop.permute.xlu0 %1802  ;;  %v1959_v44 = vld [vmem:[#allocation2 + $0x70] sm:$0xff] }
 0x23b   : > { %1958 = vst [vmem:[#allocation2 + $0x68] sm:$0xff] %v4881_v42  ;;  %1836 = vst.msk [vmem:[#allocation2 + $0x80] sm:$0xff] %vm1820_vm11, %v1803_v43  ;;  %3848 = vmatprep.mubr.msk.bf16.mxu1 %vm1454_vm10, %v4881_v42 }
 0x23d   : > { %v1896_v45 = vpop.permute.xlu1 %1895 }
 0x23e   : > { %v1960_v46 = vsel %vm4756_vm14, %v1896_v45, %v1959_v44  ;;  %v1898_v47 = vpop.permute.xlu0 %1897  ;;  %v1962_v48 = vld [vmem:[#allocation2 + $0x78] sm:$0xff] }
 0x23f   : > { %1961 = vst [vmem:[#allocation2 + $0x70] sm:$0xff] %v1960_v46  ;;  %v1963_v41 = vsel %vm4756_vm14, %v1898_v47, %v1962_v48  ;;  %3849 = vmatmul.mubr.msk.bf16.gmra.mrb[24].mxu1 %vm1454_vm10, %v1960_v46 }
 0x240   : > { %1964 = vst [vmem:[#allocation2 + $0x78] sm:$0xff] %v1963_v41  ;;  %3852 = vmatprep.mubr.msk.bf16.mxu1 %vm1454_vm10, %v1963_v41 }
 0x241   : > { %v1900_v49 = vpop.permute.xlu1 %1899 }
 0x242   : > { %v1965_v51 = vld [vmem:[#allocation2 + $0x80] sm:$0xff] }
 0x243   : > { %v1966_v52 = vsel %vm4756_vm14, %v1900_v49, %v1965_v51 }
 0x244   : > { %1967 = vst [vmem:[#allocation2 + $0x80] sm:$0xff] %v1966_v52 }
 0x247   : > { %3853 = vmatmul.mubr.msk.bf16.gmra.mrb[28].mxu1 %vm1454_vm10, %v1966_v52 }
 0x248   : > { %3868 = vmatprep.mubr.msk.bf16.mxu1 %vm1454_vm10, %v1968_v53 }
 0x24f   : > { %3869 = vmatmul.mubr.msk.bf16.vlgmr.msra.gmra.mrb[0].mxu1 %vm1454_vm10, %v4762_v50  ;;  %v4204_v50 = vld [vmem:[%s5132_s3 + $0x80] sm:$0xff]  }
 0x250   : > { %3872 = vmatprep.mubr.msk.bf16.mxu1 %vm1454_vm10, %v4774_v55  ;;  %3901 = vmatpush3.bf16.msra.mxu1 %v4828_v15 }
 0x251   : > { %3902 = vmatprep.subr.bf16.mxu1 %v4201_v54 }
 0x254   : > { %3903 = vmatpush3.bf16.msra.mxu1 %v4201_v54 }
 0x255   : > { %3904 = vmatprep.subr.bf16.mxu1 %v4202_v56 }
 0x257   : > { %3873 = vmatmul.mubr.msk.bf16.gmra.mrb[4].mxu1 %vm1454_vm10, %v4786_v62 }
 0x258   : > { %3876 = vmatprep.mubr.msk.bf16.mxu1 %vm1454_vm10, %v4797_v2  ;;  %3905 = vmatpush3.bf16.msra.mxu1 %v4202_v56 }
 0x259   : > { %3906 = vmatprep.subr.bf16.mxu1 %v4203_v57 }
 0x25c   : > { %3907 = vmatpush3.bf16.msra.mxu1 %v4203_v57 }
 0x25d   : > { %3908 = vmatprep.subr.bf16.mxu1 %v4204_v50 }
 0x25f   : > { %3877 = vmatmul.mubr.msk.bf16.gmra.mrb[8].mxu1 %vm1454_vm10, %v4808_v7 }
 0x260   : > { %3880 = vmatprep.mubr.msk.bf16.mxu1 %vm1454_vm10, %v4819_v8  ;;  %3909 = vmatpush3.bf16.msra.mxu1 %v4204_v50 }
 0x261   : > { %3910 = vmatprep.subr.bf16.mxu1 %v4205_v58 }
 0x264   : > { %3911 = vmatpush3.bf16.msra.mxu1 %v4205_v58 }
 0x267   : > { %3881 = vmatmul.mubr.msk.bf16.gmra.mrb[12].mxu1 %vm1454_vm10, %v4832_v16 }
 0x268   : > { %3884 = vmatprep.mubr.msk.bf16.mxu1 %vm1454_vm10, %v4841_v20 }
 0x26f   : > { %3885 = vmatmul.mubr.msk.bf16.gmra.mrb[16].mxu1 %vm1454_vm10, %v4849_v25 }
 0x270   : > { %3888 = vmatprep.mubr.msk.bf16.mxu1 %vm1454_vm10, %v4857_v29 }
 0x277   : > { %3889 = vmatmul.mubr.msk.bf16.gmra.mrb[20].mxu1 %vm1454_vm10, %v4865_v34 }
 0x278   : > { %3892 = vmatprep.mubr.msk.bf16.mxu1 %vm1454_vm10, %v4873_v38 }
 0x27f   : > { %3893 = vmatmul.mubr.msk.bf16.gmra.mrb[24].mxu1 %vm1454_vm10, %v4881_v42 }
 0x280   : > { %3896 = vmatprep.mubr.msk.bf16.mxu1 %vm1454_vm10, %v1960_v46 }
 0x287   : > { %3897 = vmatmul.mubr.msk.bf16.gmra.mrb[28].mxu1 %vm1454_vm10, %v1963_v41 }
 0x288   : > { %3912 = vmatprep.mubr.msk.bf16.mxu1 %vm1454_vm10, %v4774_v55  ;;  %v2531_v55 = vld [vmem:[#allocation2 + $0x88] sm:$0xff] }
 0x28f   : > { %3913 = vmatmul.mubr.msk.bf16.vlgmr.msra.gmra.mrb[0].mxu1 %vm1454_vm10, %v4786_v62 }
 0x290   : > { %3916 = vmatprep.mubr.msk.bf16.mxu1 %vm1454_vm10, %v4797_v2 }
 0x297   : > { %3917 = vmatmul.mubr.msk.bf16.gmra.mrb[4].mxu1 %vm1454_vm10, %v4808_v7 }
 0x298   : > { %3920 = vmatprep.mubr.msk.bf16.mxu1 %vm1454_vm10, %v4819_v8 }
 0x29f   : > { %3921 = vmatmul.mubr.msk.bf16.gmra.mrb[8].mxu1 %vm1454_vm10, %v4832_v16 }
 0x2a0   : > { %3924 = vmatprep.mubr.msk.bf16.mxu1 %vm1454_vm10, %v4841_v20 }
 0x2a7   : > { %3925 = vmatmul.mubr.msk.bf16.gmra.mrb[12].mxu1 %vm1454_vm10, %v4849_v25 }
 0x2a8   : > { %3928 = vmatprep.mubr.msk.bf16.mxu1 %vm1454_vm10, %v4857_v29 }
 0x2af   : > { %3929 = vmatmul.mubr.msk.bf16.gmra.mrb[16].mxu1 %vm1454_vm10, %v4865_v34 }
 0x2b0   : > { %3932 = vmatprep.mubr.msk.bf16.mxu1 %vm1454_vm10, %v4873_v38 }
 0x2b7   : > { %3933 = vmatmul.mubr.msk.bf16.gmra.mrb[20].mxu1 %vm1454_vm10, %v4881_v42 }
 0x2b8   : > { %3936 = vmatprep.mubr.msk.bf16.mxu1 %vm1454_vm10, %v1960_v46 }
 0x2bf   : > { %3937 = vmatmul.mubr.msk.bf16.gmra.mrb[24].mxu1 %vm1454_vm10, %v1963_v41 }
 0x2c0   : > { %3940 = vmatprep.mubr.msk.bf16.mxu1 %vm1454_vm10, %v1966_v52 }
 0x2c7   : > { %3941 = vmatmul.mubr.msk.bf16.gmra.mrb[28].mxu1 %vm1454_vm10, %v2531_v55 }
 0x362   : > { %v3914_v60 = vpop.f32.mrb[0].mxu1 }
 0x363   : > { %v2831_v62 = vadd.f32 %v3914_v60, %v4972_v59  ;;  %v2663_v63 = vpop.f32.mrb[1].mxu1 }
 0x364   : > { %v2829_v24 = vadd.f32 %v4972_v59, %v2663_v63  ;;  %v3915_v0 = vpop.f32.mrb[2].mxu1 }
 0x365   : > { %vm2863_vm0 = vcmp.ge.f32.partialorder %v2831_v62, 0.0  ;;  %v2895_v1 = vmul.f32 0.2, %v2831_v62  ;;  %v2832_v2 = vadd.f32 %v3915_v0, %v4972_v59  ;;  %v2666_v3 = vpop.f32.mrb[3].mxu1 }
 0x366   : > { %vm2861_vm15 = vcmp.ge.f32.partialorder %v2829_v24, 0.0  ;;  %v2893_v4 = vmul.f32 0.2, %v2829_v24  ;;  %v2830_v61 = vadd.f32 %v4972_v59, %v2666_v3 }
 0x367   : > { %v2927_v6 = vsel %vm2863_vm0, %v2831_v62, %v2895_v1  ;;  %vm2864_vm2 = vcmp.ge.f32.partialorder %v2832_v2, 0.0  ;;  %v2896_v7 = vmul.f32 0.2, %v2832_v2 }
 0x368   : > { %v3499_v9 = vpack.c.bf16 %v2927_v6, %v2927_v6  ;;  %v2925_v10 = vsel %vm2861_vm15, %v2829_v24, %v2893_v4  ;;  %vm2862_vm3 = vcmp.ge.f32.partialorder %v2830_v61, 0.0  ;;  %v2894_v11 = vmul.f32 0.2, %v2830_v61 }
 0x369   : > { %v3497_v13 = vpack.c.bf16 %v2925_v10, %v2925_v10  ;;  %v2928_v8 = vsel %vm2864_vm2, %v2832_v2, %v2896_v7 }
 0x36a   : > { %3088 = vst.msk [vmem:[%s4981_s9 + $0x8] sm:$0xf] %vm3085_vm1, %v3499_v9  ;;  %v3500_v12 = vpack.c.bf16 %v2928_v8, %v2928_v8  ;;  %v2926_v5 = vsel %vm2862_vm3, %v2830_v61, %v2894_v11  ;;  %v3918_v14 = vpop.f32.mrb[4].mxu1 }
 0x36b   : > { %3086 = vst.msk [vmem:[%s4981_s9] sm:$0xf] %vm3085_vm1, %v3497_v13  ;;  %v3498_v15 = vpack.c.bf16 %v2926_v5, %v2926_v5  ;;  %v2835_v16 = vadd.f32 %v3918_v14, %v4972_v59  ;;  %v2679_v17 = vpop.f32.mrb[5].mxu1 }
 0x36c   : > { %3089 = vst.msk [vmem:[%s4981_s9 + $0xc] sm:$0xf] %vm3085_vm1, %v3500_v12  ;;  %v2833_v18 = vadd.f32 %v4972_v59, %v2679_v17  ;;  %v3919_v19 = vpop.f32.mrb[6].mxu1 }
 0x36d   : > { %3087 = vst.msk [vmem:[%s4981_s9 + $0x4] sm:$0xf] %vm3085_vm1, %v3498_v15  ;;  %vm2867_vm4 = vcmp.ge.f32.partialorder %v2835_v16, 0.0  ;;  %v2899_v20 = vmul.f32 0.2, %v2835_v16  ;;  %v2836_v21 = vadd.f32 %v3919_v19, %v4972_v59  ;;  %v2682_v22 = vpop.f32.mrb[7].mxu1 }
 0x36e   : > { %vm2865_vm5 = vcmp.ge.f32.partialorder %v2833_v18, 0.0  ;;  %v2897_v23 = vmul.f32 0.2, %v2833_v18  ;;  %v2834_v25 = vadd.f32 %v4972_v59, %v2682_v22 }
 0x36f   : > { %v2931_v26 = vsel %vm2867_vm4, %v2835_v16, %v2899_v20  ;;  %vm2868_vm6 = vcmp.ge.f32.partialorder %v2836_v21, 0.0  ;;  %v2900_v27 = vmul.f32 0.2, %v2836_v21 }
 0x370   : > { %v3503_v28 = vpack.c.bf16 %v2931_v26, %v2931_v26  ;;  %v2929_v29 = vsel %vm2865_vm5, %v2833_v18, %v2897_v23  ;;  %vm2866_vm7 = vcmp.ge.f32.partialorder %v2834_v25, 0.0  ;;  %v2898_v30 = vmul.f32 0.2, %v2834_v25 }
 0x371   : > { %v3501_v31 = vpack.c.bf16 %v2929_v29, %v2929_v29  ;;  %v2932_v33 = vsel %vm2868_vm6, %v2836_v21, %v2900_v27 }
 0x372   : > { %3092 = vst.msk [vmem:[%s4981_s9 + $0x18] sm:$0xf] %vm3085_vm1, %v3503_v28  ;;  %v3504_v34 = vpack.c.bf16 %v2932_v33, %v2932_v33  ;;  %v2930_v35 = vsel %vm2866_vm7, %v2834_v25, %v2898_v30  ;;  %v3922_v36 = vpop.f32.mrb[8].mxu1 }
 0x373   : > { %3090 = vst.msk [vmem:[%s4981_s9 + $0x10] sm:$0xf] %vm3085_vm1, %v3501_v31  ;;  %v3502_v37 = vpack.c.bf16 %v2930_v35, %v2930_v35  ;;  %v2839_v38 = vadd.f32 %v3922_v36, %v4972_v59  ;;  %v2695_v39 = vpop.f32.mrb[9].mxu1 }
 0x374   : > { %3093 = vst.msk [vmem:[%s4981_s9 + $0x1c] sm:$0xf] %vm3085_vm1, %v3504_v34  ;;  %v2837_v40 = vadd.f32 %v4972_v59, %v2695_v39  ;;  %v3923_v32 = vpop.f32.mrb[10].mxu1 }
 0x375   : > { %3091 = vst.msk [vmem:[%s4981_s9 + $0x14] sm:$0xf] %vm3085_vm1, %v3502_v37  ;;  %vm2871_vm8 = vcmp.ge.f32.partialorder %v2839_v38, 0.0  ;;  %v2903_v42 = vmul.f32 0.2, %v2839_v38  ;;  %v2840_v43 = vadd.f32 %v3923_v32, %v4972_v59  ;;  %v2698_v44 = vpop.f32.mrb[11].mxu1 }
 0x376   : > { %vm2869_vm9 = vcmp.ge.f32.partialorder %v2837_v40, 0.0  ;;  %v2901_v45 = vmul.f32 0.2, %v2837_v40  ;;  %v2838_v46 = vadd.f32 %v4972_v59, %v2698_v44 }
 0x377   : > { %v2935_v47 = vsel %vm2871_vm8, %v2839_v38, %v2903_v42  ;;  %vm2872_vm10 = vcmp.ge.f32.partialorder %v2840_v43, 0.0  ;;  %v2904_v48 = vmul.f32 0.2, %v2840_v43 }
 0x378   : > { %v3507_v41 = vpack.c.bf16 %v2935_v47, %v2935_v47  ;;  %v2933_v49 = vsel %vm2869_vm9, %v2837_v40, %v2901_v45  ;;  %vm2870_vm11 = vcmp.ge.f32.partialorder %v2838_v46, 0.0  ;;  %v2902_v51 = vmul.f32 0.2, %v2838_v46 }
 0x379   : > { %v3505_v52 = vpack.c.bf16 %v2933_v49, %v2933_v49  ;;  %v2936_v53 = vsel %vm2872_vm10, %v2840_v43, %v2904_v48 }
 0x37a   : > { %3096 = vst.msk [vmem:[%s4981_s9 + $0x28] sm:$0xf] %vm3085_vm1, %v3507_v41  ;;  %v3508_v54 = vpack.c.bf16 %v2936_v53, %v2936_v53  ;;  %v2934_v56 = vsel %vm2870_vm11, %v2838_v46, %v2902_v51  ;;  %v3926_v57 = vpop.f32.mrb[12].mxu1 }
 0x37b   : > { %3094 = vst.msk [vmem:[%s4981_s9 + $0x20] sm:$0xf] %vm3085_vm1, %v3505_v52  ;;  %v3506_v50 = vpack.c.bf16 %v2934_v56, %v2934_v56  ;;  %v2843_v58 = vadd.f32 %v3926_v57, %v4972_v59  ;;  %v2711_v55 = vpop.f32.mrb[13].mxu1 }
 0x37c   : > { %3097 = vst.msk [vmem:[%s4981_s9 + $0x2c] sm:$0xf] %vm3085_vm1, %v3508_v54  ;;  %v2841_v60 = vadd.f32 %v4972_v59, %v2711_v55  ;;  %v3927_v62 = vpop.f32.mrb[14].mxu1 }
 0x37d   : > { %3095 = vst.msk [vmem:[%s4981_s9 + $0x24] sm:$0xf] %vm3085_vm1, %v3506_v50  ;;  %vm2875_vm12 = vcmp.ge.f32.partialorder %v2843_v58, 0.0  ;;  %v2907_v63 = vmul.f32 0.2, %v2843_v58  ;;  %v2844_v24 = vadd.f32 %v3927_v62, %v4972_v59  ;;  %v2714_v0 = vpop.f32.mrb[15].mxu1 }
 0x37e   : > { %vm2873_vm13 = vcmp.ge.f32.partialorder %v2841_v60, 0.0  ;;  %v2905_v1 = vmul.f32 0.2, %v2841_v60  ;;  %v2842_v2 = vadd.f32 %v4972_v59, %v2714_v0 }
 0x37f   : > { %v2939_v3 = vsel %vm2875_vm12, %v2843_v58, %v2907_v63  ;;  %vm2876_vm14 = vcmp.ge.f32.partialorder %v2844_v24, 0.0  ;;  %v2908_v4 = vmul.f32 0.2, %v2844_v24 }
 0x380   : > { %v3511_v61 = vpack.c.bf16 %v2939_v3, %v2939_v3  ;;  %v2937_v6 = vsel %vm2873_vm13, %v2841_v60, %v2905_v1  ;;  %vm2874_vm0 = vcmp.ge.f32.partialorder %v2842_v2, 0.0  ;;  %v2906_v7 = vmul.f32 0.2, %v2842_v2 }
 0x381   : > { %v3509_v9 = vpack.c.bf16 %v2937_v6, %v2937_v6  ;;  %v2940_v10 = vsel %vm2876_vm14, %v2844_v24, %v2908_v4 }
 0x382   : > { %3100 = vst.msk [vmem:[%s4981_s9 + $0x38] sm:$0xf] %vm3085_vm1, %v3511_v61  ;;  %v3512_v11 = vpack.c.bf16 %v2940_v10, %v2940_v10  ;;  %v2938_v13 = vsel %vm2874_vm0, %v2842_v2, %v2906_v7  ;;  %v3930_v8 = vpop.f32.mrb[16].mxu1 }
 0x383   : > { %3098 = vst.msk [vmem:[%s4981_s9 + $0x30] sm:$0xf] %vm3085_vm1, %v3509_v9  ;;  %v3510_v12 = vpack.c.bf16 %v2938_v13, %v2938_v13  ;;  %v2847_v5 = vadd.f32 %v3930_v8, %v4972_v59  ;;  %v2727_v14 = vpop.f32.mrb[17].mxu1 }
 0x384   : > { %3101 = vst.msk [vmem:[%s4981_s9 + $0x3c] sm:$0xf] %vm3085_vm1, %v3512_v11  ;;  %v2845_v15 = vadd.f32 %v4972_v59, %v2727_v14  ;;  %v3931_v16 = vpop.f32.mrb[18].mxu1 }
 0x385   : > { %3099 = vst.msk [vmem:[%s4981_s9 + $0x34] sm:$0xf] %vm3085_vm1, %v3510_v12  ;;  %vm2879_vm15 = vcmp.ge.f32.partialorder %v2847_v5, 0.0  ;;  %v2911_v17 = vmul.f32 0.2, %v2847_v5  ;;  %v2848_v18 = vadd.f32 %v3931_v16, %v4972_v59  ;;  %v2730_v19 = vpop.f32.mrb[19].mxu1 }
 0x386   : > { %vm2877_vm2 = vcmp.ge.f32.partialorder %v2845_v15, 0.0  ;;  %v2909_v20 = vmul.f32 0.2, %v2845_v15  ;;  %v2846_v21 = vadd.f32 %v4972_v59, %v2730_v19 }
 0x387   : > { %v2943_v22 = vsel %vm2879_vm15, %v2847_v5, %v2911_v17  ;;  %vm2880_vm3 = vcmp.ge.f32.partialorder %v2848_v18, 0.0  ;;  %v2912_v23 = vmul.f32 0.2, %v2848_v18 }
 0x388   : > { %v3515_v25 = vpack.c.bf16 %v2943_v22, %v2943_v22  ;;  %v2941_v26 = vsel %vm2877_vm2, %v2845_v15, %v2909_v20  ;;  %vm2878_vm4 = vcmp.ge.f32.partialorder %v2846_v21, 0.0  ;;  %v2910_v27 = vmul.f32 0.2, %v2846_v21 }
 0x389   : > { %v3513_v28 = vpack.c.bf16 %v2941_v26, %v2941_v26  ;;  %v2944_v29 = vsel %vm2880_vm3, %v2848_v18, %v2912_v23 }
 0x38a   : > { %3104 = vst.msk [vmem:[%s4981_s9 + $0x48] sm:$0xf] %vm3085_vm1, %v3515_v25  ;;  %v3516_v30 = vpack.c.bf16 %v2944_v29, %v2944_v29  ;;  %v2942_v31 = vsel %vm2878_vm4, %v2846_v21, %v2910_v27  ;;  %v3934_v33 = vpop.f32.mrb[20].mxu1 }
 0x38b   : > { %3102 = vst.msk [vmem:[%s4981_s9 + $0x40] sm:$0xf] %vm3085_vm1, %v3513_v28  ;;  %v3514_v34 = vpack.c.bf16 %v2942_v31, %v2942_v31  ;;  %v2851_v35 = vadd.f32 %v3934_v33, %v4972_v59  ;;  %v2743_v36 = vpop.f32.mrb[21].mxu1 }
 0x38c   : > { %3105 = vst.msk [vmem:[%s4981_s9 + $0x4c] sm:$0xf] %vm3085_vm1, %v3516_v30  ;;  %v2849_v37 = vadd.f32 %v4972_v59, %v2743_v36  ;;  %v3935_v38 = vpop.f32.mrb[22].mxu1 }
 0x38d   : > { %3103 = vst.msk [vmem:[%s4981_s9 + $0x44] sm:$0xf] %vm3085_vm1, %v3514_v34  ;;  %vm2883_vm5 = vcmp.ge.f32.partialorder %v2851_v35, 0.0  ;;  %v2915_v39 = vmul.f32 0.2, %v2851_v35  ;;  %v2852_v40 = vadd.f32 %v3935_v38, %v4972_v59  ;;  %v2746_v32 = vpop.f32.mrb[23].mxu1 }
 0x38e   : > { %vm2881_vm6 = vcmp.ge.f32.partialorder %v2849_v37, 0.0  ;;  %v2913_v42 = vmul.f32 0.2, %v2849_v37  ;;  %v2850_v43 = vadd.f32 %v4972_v59, %v2746_v32 }
 0x38f   : > { %v2947_v44 = vsel %vm2883_vm5, %v2851_v35, %v2915_v39  ;;  %vm2884_vm7 = vcmp.ge.f32.partialorder %v2852_v40, 0.0  ;;  %v2916_v45 = vmul.f32 0.2, %v2852_v40 }
 0x390   : > { %v3519_v46 = vpack.c.bf16 %v2947_v44, %v2947_v44  ;;  %v2945_v47 = vsel %vm2881_vm6, %v2849_v37, %v2913_v42  ;;  %vm2882_vm8 = vcmp.ge.f32.partialorder %v2850_v43, 0.0  ;;  %v2914_v48 = vmul.f32 0.2, %v2850_v43 }
 0x391   : > { %v3517_v41 = vpack.c.bf16 %v2945_v47, %v2945_v47  ;;  %v2948_v49 = vsel %vm2884_vm7, %v2852_v40, %v2916_v45 }
 0x392   : > { %3108 = vst.msk [vmem:[%s4981_s9 + $0x58] sm:$0xf] %vm3085_vm1, %v3519_v46  ;;  %v3520_v51 = vpack.c.bf16 %v2948_v49, %v2948_v49  ;;  %v2946_v52 = vsel %vm2882_vm8, %v2850_v43, %v2914_v48  ;;  %v3938_v53 = vpop.f32.mrb[24].mxu1 }
 0x393   : > { %3106 = vst.msk [vmem:[%s4981_s9 + $0x50] sm:$0xf] %vm3085_vm1, %v3517_v41  ;;  %v3518_v54 = vpack.c.bf16 %v2946_v52, %v2946_v52  ;;  %v2855_v56 = vadd.f32 %v3938_v53, %v4972_v59  ;;  %v2759_v57 = vpop.f32.mrb[25].mxu1 }
 0x394   : > { %3109 = vst.msk [vmem:[%s4981_s9 + $0x5c] sm:$0xf] %vm3085_vm1, %v3520_v51  ;;  %v2853_v50 = vadd.f32 %v4972_v59, %v2759_v57  ;;  %v3939_v58 = vpop.f32.mrb[26].mxu1 }
 0x395   : > { %3107 = vst.msk [vmem:[%s4981_s9 + $0x54] sm:$0xf] %vm3085_vm1, %v3518_v54  ;;  %vm2887_vm9 = vcmp.ge.f32.partialorder %v2855_v56, 0.0  ;;  %v2919_v55 = vmul.f32 0.2, %v2855_v56  ;;  %v2856_v60 = vadd.f32 %v3939_v58, %v4972_v59  ;;  %v2762_v62 = vpop.f32.mrb[27].mxu1 }
 0x396   : > { %vm2885_vm10 = vcmp.ge.f32.partialorder %v2853_v50, 0.0  ;;  %v2917_v63 = vmul.f32 0.2, %v2853_v50  ;;  %v2854_v24 = vadd.f32 %v4972_v59, %v2762_v62 }
 0x397   : > { %v2951_v0 = vsel %vm2887_vm9, %v2855_v56, %v2919_v55  ;;  %vm2888_vm11 = vcmp.ge.f32.partialorder %v2856_v60, 0.0  ;;  %v2920_v1 = vmul.f32 0.2, %v2856_v60 }
 0x398   : > { %v3523_v2 = vpack.c.bf16 %v2951_v0, %v2951_v0  ;;  %v2949_v3 = vsel %vm2885_vm10, %v2853_v50, %v2917_v63  ;;  %vm2886_vm12 = vcmp.ge.f32.partialorder %v2854_v24, 0.0  ;;  %v2918_v4 = vmul.f32 0.2, %v2854_v24 }
 0x399   : > { %v3521_v61 = vpack.c.bf16 %v2949_v3, %v2949_v3  ;;  %v2952_v6 = vsel %vm2888_vm11, %v2856_v60, %v2920_v1 }
 0x39a   : > { %3112 = vst.msk [vmem:[%s4981_s9 + $0x68] sm:$0xf] %vm3085_vm1, %v3523_v2  ;;  %v3524_v7 = vpack.c.bf16 %v2952_v6, %v2952_v6  ;;  %v2950_v9 = vsel %vm2886_vm12, %v2854_v24, %v2918_v4  ;;  %v3942_v10 = vpop.f32.mrb[28].mxu1 }
 0x39b   : > { %3110 = vst.msk [vmem:[%s4981_s9 + $0x60] sm:$0xf] %vm3085_vm1, %v3521_v61  ;;  %v3522_v11 = vpack.c.bf16 %v2950_v9, %v2950_v9  ;;  %v2859_v13 = vadd.f32 %v3942_v10, %v4972_v59  ;;  %v2775_v8 = vpop.f32.mrb[29].mxu1 }
 0x39c   : > { %3113 = vst.msk [vmem:[%s4981_s9 + $0x6c] sm:$0xf] %vm3085_vm1, %v3524_v7  ;;  %v2857_v12 = vadd.f32 %v4972_v59, %v2775_v8  ;;  %v3943_v5 = vpop.f32.mrb[30].mxu1 }
 0x39d   : > { %3111 = vst.msk [vmem:[%s4981_s9 + $0x64] sm:$0xf] %vm3085_vm1, %v3522_v11  ;;  %vm2891_vm13 = vcmp.ge.f32.partialorder %v2859_v13, 0.0  ;;  %v2923_v14 = vmul.f32 0.2, %v2859_v13  ;;  %v2860_v15 = vadd.f32 %v3943_v5, %v4972_v59  ;;  %v2778_v16 = vpop.f32.mrb[31].mxu1 }
 0x39e   : > { %vm2889_vm14 = vcmp.ge.f32.partialorder %v2857_v12, 0.0  ;;  %v2921_v17 = vmul.f32 0.2, %v2857_v12  ;;  %v2858_v18 = vadd.f32 %v4972_v59, %v2778_v16 }
 0x39f   : > { %v2955_v19 = vsel %vm2891_vm13, %v2859_v13, %v2923_v14  ;;  %vm2892_vm0 = vcmp.ge.f32.partialorder %v2860_v15, 0.0  ;;  %v2924_v20 = vmul.f32 0.2, %v2860_v15 }
 0x3a0   : > { %v3527_v21 = vpack.c.bf16 %v2955_v19, %v2955_v19  ;;  %v2953_v22 = vsel %vm2889_vm14, %v2857_v12, %v2921_v17  ;;  %vm2890_vm15 = vcmp.ge.f32.partialorder %v2858_v18, 0.0  ;;  %v2922_v23 = vmul.f32 0.2, %v2858_v18 }
 0x3a1   : > { %v3525_v25 = vpack.c.bf16 %v2953_v22, %v2953_v22  ;;  %v2956_v26 = vsel %vm2892_vm0, %v2860_v15, %v2924_v20 }
 0x3a2   : > { %3116 = vst.msk [vmem:[%s4981_s9 + $0x78] sm:$0xf] %vm3085_vm1, %v3527_v21  ;;  %v3528_v27 = vpack.c.bf16 %v2956_v26, %v2956_v26  ;;  %v2954_v59 = vsel %vm2890_vm15, %v2858_v18, %v2922_v23 }
 0x3a3   : > { %3114 = vst.msk [vmem:[%s4981_s9 + $0x70] sm:$0xf] %vm3085_vm1, %v3525_v25  ;;  %v3526_v28 = vpack.c.bf16 %v2954_v59, %v2954_v59 }
 0x3a4   : > { %3117 = vst.msk [vmem:[%s4981_s9 + $0x7c] sm:$0xf] %vm3085_vm1, %v3528_v27 }
 0x3a5   : > { %3115 = vst.msk [vmem:[%s4981_s9 + $0x74] sm:$0xf] %vm3085_vm1, %v3526_v28 }
 0x3a6   : > { %4219 = shalt.err (!%p4216_p3)
}
 0x3a7   : > { %s4220_s26 = scalar_lea.hbm %s5074_s14, 2048  ;;  %s4224_s7 = scalar_lea.hbm %s5134_s5, 4096 }
 0x3a8   : > { %p4221_p4 = scmp.ne.s32.totalorder %s5074_s14, %s4220_s26  ;;  %p4225_p9 = scmp.lt.u32.totalorder %s5074_s14, %s5134_s5 }
 0x3a9   : > { %p4226_p10 = scmp.lt.u32.totalorder %s4224_s7, %s4220_s26  ;;  %p4228_p12 = scmp.lt.u32.totalorder %s4220_s26, %s5074_s14 }
 0x3aa   : > { %p4222_p7 = pnand %p4221_p4, %p4343_p5 }
 0x3ab   : > { %p4227_p11 = por %p4226_p10, %p4225_p9 }
 0x3ac   : > { %p4223_p8 = pneg %p4222_p7 }
 0x3ad   : > { %p4229_p13 = por %p4228_p12, %p4227_p11 }
 0x3af   : > { %p4230_p0 = pnand %p4229_p13, %p4223_p8 }
 0x3b1   : > { %4233 = shalt.err (!%p4230_p0)
}
 0x3b2   : > { %s4274_s10 = smov 4  }
 0x3b3   : > { %4073 = dma.vmem_to_hbm [thread:$0]  (%p4343_p5), %s5078_s15, 2048, %s5074_s14, %s5086_s22, %s4271_s11, %s4271_s11, %s4274_s10  }
 0x3b4 PF: > { %p4079_p1 = scmp.ge.s32.totalorder %s4268_s21, 2  ;;  %s3147_s12 = sand.u32 1, %s4256_s18  }
 0x3b5   : > { %s3148_s13 = scalar_lea.sflag [#allocation4], %s3147_s12 }
 0x3b6   : > { %p4076_p2 = pnand %p4079_p1, %p4347_p6 }
 0x3b8   : > { %4251 = dma.done.wait (!%p4076_p2), %s3148_s13, 2048  }
 0x3b9   : > { %4253 = vsyncadd (!%p4076_p2), %s3148_s13, 4294965248  ;;  %p15_p3 = scmp.ge.s32.totalorder %s4330_s24, 4   ;;  %s5145_s18 = smov %s4260_s19 }
 0x3ba   : > { %s5146_s19 = smov %s4264_s20  ;;  %s5147_s20 = smov %s4341_s27 }
 0x3bb   : > { %s5148_s21 = smov %s4330_s24  ;;  %17 = sbr.rel (!%p15_p3) target bundleno = 3 (0x3), region = 84 }
 0x3c2   :  { %3153 = vsyncpa [#allocation4], 1 }
 0x3c3   :  { %3155 = vsyncpa [#allocation4 + $0x1], 1 }

</bundles_post_ra>
